<compile_context>
chip_gen: v7x
topology: tpu7x:2x2x1
jax: 0.10.0
libtpu: 0.0.40
codegen_flags: <defaults>
</compile_context>

<pallas_src>
import jax
import jax.numpy as jnp
from jax.experimental import pallas as pl
from jax.experimental.pallas import tpu as pltpu


def _round_up(x, m):
    return ((x + m - 1) // m) * m


def dam_head_kernel(feat_ref, w1_ref, b1_ref, w2_ref, b2_ref, out_ref):
    """Fused: GAP over spatial -> Linear -> sigmoid -> Linear -> sigmoid.

    feat_ref: [TILE_B, C, S]  backbone feature map, native channels-first layout
              (bf16 storage; S = H*W on the lane axis)
    w1_ref:   [C, H1]   layer1 weight (transposed vs. torch)
    b1_ref:   [1, H1]
    w2_ref:   [H1, O]   layer2 weight (transposed vs. torch)
    b2_ref:   [1, O]
    out_ref:  [TILE_B, O]
    """
    # bf16 is storage/DMA dtype only; compute in f32 (v5e has no bf16 VPU/EUP).
    feat = feat_ref[...].astype(jnp.float32)           # [TILE_B, C, S]

    # Global average pool over spatial positions (resnet avgpool -> feats).
    # Reduce over the lane axis; result [TILE_B, C] has C on lanes, which is
    # exactly the layout the first matmul wants.
    feats = jnp.mean(feat, axis=-1)                     # [TILE_B, C]

    # layer1 + sigmoid
    h = jnp.dot(feats, w1_ref[...], preferred_element_type=jnp.float32)
    h = jax.nn.sigmoid(h + b1_ref[...])                 # [TILE_B, H1]

    # layer2 + sigmoid
    o = jnp.dot(h, w2_ref[...], preferred_element_type=jnp.float32)
    o = jax.nn.sigmoid(o + b2_ref[...])                 # [TILE_B, O]

    out_ref[...] = o.astype(out_ref.dtype)


def dam_debug_forward(feat_map_nchw, w1, b1, w2, b2, *, max_tile_b=128):
    """feat_map_nchw: [B, C, H, W] backbone feature map (PyTorch NCHW).

    Returns [B, output_dim] float32.
    """
    B, C, H, W = feat_map_nchw.shape
    S = H * W
    hidden = w1.shape[1]
    out_dim = w2.shape[1]

    # Native layout: contiguous reshape only, no HBM transpose round trip.
    # Stream the (dominant) feature-map read in bf16.
    feat = feat_map_nchw.reshape(B, C, S).astype(jnp.bfloat16)

    # Batch tiling: cap TILE_B at 128 (bounds GAP vreg pressure, v7x-VMEM-safe:
    # 128*128*64*2B = 2 MiB per buffer), pad B up to a multiple of the tile.
    tile_b = min(max_tile_b, _round_up(B, 8))
    b_pad = _round_up(B, tile_b)
    if b_pad != B:
        feat = jnp.pad(feat, ((0, b_pad - B), (0, 0), (0, 0)))

    grid = (b_pad // tile_b,)

    cost = pl.CostEstimate(
        flops=2 * b_pad * (C * S + C * hidden + hidden * out_dim),
        transcendentals=b_pad * (hidden + out_dim),
        bytes_accessed=(b_pad * C * S * feat.dtype.itemsize
                        + (C * hidden + hidden + hidden * out_dim + out_dim) * 4
                        + b_pad * out_dim * 4),
    )

    out = pl.pallas_call(
        dam_head_kernel,
        out_shape=jax.ShapeDtypeStruct((b_pad, out_dim), jnp.float32),
        grid_spec=pltpu.PrefetchScalarGridSpec(
            num_scalar_prefetch=0,
            grid=grid,
            in_specs=[
                # Feature map: tiled over batch (double-buffered by Pallas).
                pl.BlockSpec((tile_b, C, S), lambda i: (i, 0, 0)),
                # Weights/biases: constant index_map -> resident across steps.
                pl.BlockSpec((C, hidden), lambda i: (0, 0)),
                pl.BlockSpec((1, hidden), lambda i: (0, 0)),
                pl.BlockSpec((hidden, out_dim), lambda i: (0, 0)),
                pl.BlockSpec((1, out_dim), lambda i: (0, 0)),
            ],
            out_specs=pl.BlockSpec((tile_b, out_dim), lambda i: (i, 0)),
        ),
        compiler_params=pltpu.CompilerParams(
            dimension_semantics=("parallel",),
        ),
        cost_estimate=cost,
    )(feat, w1, b1, w2, b2)

    return out[:B]


def init_params(key, input_dim=128, output_dim=10):
    """Deterministic params mimicking torch.nn.Linear default init
    (uniform(-1/sqrt(fan_in), 1/sqrt(fan_in)))."""
    hidden = int(input_dim * 0.5)
    k1, k2, k3, k4 = jax.random.split(key, 4)
    bound1 = 1.0 / (input_dim ** 0.5)
    bound2 = 1.0 / (hidden ** 0.5)
    # Stored transposed relative to torch (so the kernel does x @ W).
    w1 = jax.random.uniform(k1, (input_dim, hidden), jnp.float32, -bound1, bound1)
    b1 = jax.random.uniform(k2, (1, hidden), jnp.float32, -bound1, bound1)
    w2 = jax.random.uniform(k3, (hidden, output_dim), jnp.float32, -bound2, bound2)
    b2 = jax.random.uniform(k4, (1, output_dim), jnp.float32, -bound2, bound2)
    return w1, b1, w2, b2


if __name__ == "__main__":
    key = jax.random.PRNGKey(0)
    k_feat, k_param = jax.random.split(key)

    # Small synthetic backbone feature map: B=2, C=input_dim=128, H=W=8 (NCHW).
    B, C, H, W = 2, 128, 8, 8
    feat_map = jax.random.normal(k_feat, (B, C, H, W), dtype=jnp.float32)

    w1, b1, w2, b2 = init_params(k_param, input_dim=C, output_dim=10)

    out = dam_debug_forward(feat_map, w1, b1, w2, b2)
    out = jax.block_until_ready(out)

    # Pure-JAX reference (matching the bf16 storage rounding of the feature map).
    feat_bf = feat_map.reshape(B, C, H * W).astype(jnp.bfloat16).astype(jnp.float32)
    feats_ref = jnp.mean(feat_bf, axis=-1)                       # [B, C]
    ref = jax.nn.sigmoid(feats_ref @ w1 + b1)
    ref = jax.nn.sigmoid(ref @ w2 + b2)

    assert out.shape == (B, 10)
    assert jnp.allclose(out, ref, atol=1e-3, rtol=1e-3), "mismatch vs reference"

    print("KERNEL_OK")
</pallas_src>

<mosaic_0001>
module attributes {stable_mosaic.version = 11 : i64} {
  func.func @dam_head_kernel(%arg0: i32, %arg1: memref<8x128x64xbf16, #tpu.memory_space<vmem>>, %arg2: memref<128x64xf32, #tpu.memory_space<vmem>>, %arg3: memref<1x64xf32, #tpu.memory_space<vmem>>, %arg4: memref<64x10xf32, #tpu.memory_space<vmem>>, %arg5: memref<1x10xf32, #tpu.memory_space<vmem>>, %arg6: memref<8x10xf32, #tpu.memory_space<vmem>>) attributes {dimension_semantics = [#tpu.dimension_semantics<parallel>], iteration_bounds = array<i64: 1>, scalar_prefetch = 0 : i64, scratch_operands = 0 : i64, tpu.core_type = #tpu.core_type<tc>, window_params = [{transform_indices = @transform_0, window_bounds = array<i64: 8, 128, 64>}, {pipeline_mode = #tpu.pipeline_mode<synchronous>, transform_indices = @transform_1, window_bounds = array<i64: 128, 64>}, {pipeline_mode = #tpu.pipeline_mode<synchronous>, transform_indices = @transform_2, window_bounds = array<i64: 1, 64>}, {pipeline_mode = #tpu.pipeline_mode<synchronous>, transform_indices = @transform_3, window_bounds = array<i64: 64, 10>}, {pipeline_mode = #tpu.pipeline_mode<synchronous>, transform_indices = @transform_4, window_bounds = array<i64: 1, 10>}, {transform_indices = @transform_5, window_bounds = array<i64: 8, 10>}]} {
    %c0 = arith.constant 0 : index
    %c0_0 = arith.constant 0 : index
    %c0_1 = arith.constant 0 : index
    %0 = vector.load %arg1[%c0, %c0_0, %c0_1] : memref<8x128x64xbf16, #tpu.memory_space<vmem>>, vector<8x128x64xbf16>
    %1 = arith.extf %0 : vector<8x128x64xbf16> to vector<8x128x64xf32>
    %cst = arith.constant dense<0.000000e+00> : vector<8x128xf32>
    %2 = vector.multi_reduction <add>, %1, %cst [2] : vector<8x128x64xf32> to vector<8x128xf32>
    %cst_2 = arith.constant 6.400000e+01 : f32
    %3 = vector.broadcast %cst_2 : f32 to vector<8x128xf32>
    %4 = arith.divf %2, %3 : vector<8x128xf32>
    %c0_3 = arith.constant 0 : index
    %c0_4 = arith.constant 0 : index
    %5 = vector.load %arg2[%c0_3, %c0_4] : memref<128x64xf32, #tpu.memory_space<vmem>>, vector<128x64xf32>
    %cst_5 = arith.constant dense<0.000000e+00> : vector<8x64xf32>
    %6 = tpu.matmul %4, %5, %cst_5 {dimension_numbers = #tpu.dot_dimension_numbers<[1], [0], [0], [1], [0, 0, 1, 1], [], []>} : vector<8x128xf32>, vector<128x64xf32>, vector<8x64xf32> -> vector<8x64xf32>
    %c0_6 = arith.constant 0 : index
    %c0_7 = arith.constant 0 : index
    %7 = vector.load %arg3[%c0_6, %c0_7] : memref<1x64xf32, #tpu.memory_space<vmem>>, vector<1x64xf32>
    %8 = vector.broadcast %7 : vector<1x64xf32> to vector<8x64xf32>
    %9 = arith.addf %6, %8 : vector<8x64xf32>
    %10 = arith.negf %9 : vector<8x64xf32>
    %11 = math.exp %10 : vector<8x64xf32>
    %cst_8 = arith.constant 1.000000e+00 : f32
    %12 = vector.broadcast %cst_8 : f32 to vector<8x64xf32>
    %13 = arith.addf %12, %11 : vector<8x64xf32>
    %14 = arith.divf %12, %13 : vector<8x64xf32>
    %c0_9 = arith.constant 0 : index
    %c0_10 = arith.constant 0 : index
    %15 = vector.load %arg4[%c0_9, %c0_10] : memref<64x10xf32, #tpu.memory_space<vmem>>, vector<64x10xf32>
    %cst_11 = arith.constant dense<0.000000e+00> : vector<8x10xf32>
    %16 = tpu.matmul %14, %15, %cst_11 {dimension_numbers = #tpu.dot_dimension_numbers<[1], [0], [0], [1], [0, 0, 1, 1], [], []>} : vector<8x64xf32>, vector<64x10xf32>, vector<8x10xf32> -> vector<8x10xf32>
    %c0_12 = arith.constant 0 : index
    %c0_13 = arith.constant 0 : index
    %17 = vector.load %arg5[%c0_12, %c0_13] : memref<1x10xf32, #tpu.memory_space<vmem>>, vector<1x10xf32>
    %18 = vector.broadcast %17 : vector<1x10xf32> to vector<8x10xf32>
    %19 = arith.addf %16, %18 : vector<8x10xf32>
    %20 = arith.negf %19 : vector<8x10xf32>
    %21 = math.exp %20 : vector<8x10xf32>
    %cst_14 = arith.constant 1.000000e+00 : f32
    %22 = vector.broadcast %cst_14 : f32 to vector<8x10xf32>
    %23 = arith.addf %22, %21 : vector<8x10xf32>
    %24 = arith.divf %22, %23 : vector<8x10xf32>
    %c0_15 = arith.constant 0 : index
    %c0_16 = arith.constant 0 : index
    %25 = vector.load %arg6[%c0_15, %c0_16] : memref<8x10xf32, #tpu.memory_space<vmem>>, vector<8x10xf32>
    tpu.vector_store %arg6[%c0_15, %c0_16], %24 {strides = array<i32>} : memref<8x10xf32, #tpu.memory_space<vmem>>, vector<8x10xf32>,
    return
  }
  func.func @transform_0(%arg0: i32) -> (i32, i32, i32) {
    %c0_i32 = arith.constant 0 : i32
    %c0_i32_0 = arith.constant 0 : i32
    %c0_i32_1 = arith.constant 0 : i32
    return %arg0, %c0_i32, %c0_i32_0 : i32, i32, i32
  }
  func.func @transform_1(%arg0: i32) -> (i32, i32) {
    %c0_i32 = arith.constant 0 : i32
    %c0_i32_0 = arith.constant 0 : i32
    %c0_i32_1 = arith.constant 0 : i32
    return %c0_i32, %c0_i32_0 : i32, i32
  }
  func.func @transform_2(%arg0: i32) -> (i32, i32) {
    %c0_i32 = arith.constant 0 : i32
    %c0_i32_0 = arith.constant 0 : i32
    %c0_i32_1 = arith.constant 0 : i32
    return %c0_i32, %c0_i32_0 : i32, i32
  }
  func.func @transform_3(%arg0: i32) -> (i32, i32) {
    %c0_i32 = arith.constant 0 : i32
    %c0_i32_0 = arith.constant 0 : i32
    %c0_i32_1 = arith.constant 0 : i32
    return %c0_i32, %c0_i32_0 : i32, i32
  }
  func.func @transform_4(%arg0: i32) -> (i32, i32) {
    %c0_i32 = arith.constant 0 : i32
    %c0_i32_0 = arith.constant 0 : i32
    %c0_i32_1 = arith.constant 0 : i32
    return %c0_i32, %c0_i32_0 : i32, i32
  }
  func.func @transform_5(%arg0: i32) -> (i32, i32) {
    %c0_i32 = arith.constant 0 : i32
    %c0_i32_0 = arith.constant 0 : i32
    return %arg0, %c0_i32 : i32, i32
  }
}

</mosaic_0001>

<bundles_post_ra>
// kernel: tpu_custom_call.1
= control target key start
LH: loop header
LB: loop body
LE: loop exit
PB: predicated region body
PF: predicated region fallthrough
CT: control target
= control target key end

     0   :  { %vm277_vm0 = vcmask 523264   ;;  %s3215_s0 = inlined_call_operand.vmem [shape: bf16[8,128,64], index: 0, kind: input, shape index: {}]   ;;  %s3216_s1 = inlined_call_operand.vmem [shape: f32[128,64], index: 1, kind: input, shape index: {}]   ;;  %s3217_s2 = inlined_call_operand.vmem [shape: f32[1,64], index: 2, kind: input, shape index: {}]   ;;  %s3218_s3 = inlined_call_operand.vmem [shape: f32[64,10], index: 3, kind: input, shape index: {}]   ;;  %s3219_s4 = inlined_call_operand.vmem [shape: f32[1,10], index: 4, kind: input, shape index: {}]   ;;  %s3220_s5 = inlined_call_operand.hbm [shape: f32[8,10], index: 5, kind: output, shape index: {}]  }
   0x1   :  { %v2075_v0 = vld [vmem:[%s3215_s0 + $0x40] sm:$0xff]   ;;  %v2076_v6 = vld [vmem:[%s3215_s0 + $0x48] sm:$0xff]  }
   0x2   :  { %v1813_v1 = vld [vmem:[%s3215_s0] sm:$0xff]   ;;  %v1846_v2 = vunpack.c.l.bf16 %v2075_v0  ;;  %v1847_v4 = vunpack.c.h.bf16 %v2075_v0  ;;  %v2068_v7 = vld [vmem:[%s3215_s0 + $0x8] sm:$0xff]   ;;  %v1850_v12 = vunpack.c.l.bf16 %v2076_v6  ;;  %v1851_v21 = vunpack.c.h.bf16 %v2076_v6 }
   0x3   :  { %v1814_v3 = vunpack.c.l.bf16 %v1813_v1  ;;  %v1815_v5 = vunpack.c.h.bf16 %v1813_v1  ;;  %v1818_v13 = vunpack.c.l.bf16 %v2068_v7  ;;  %v2083_v14 = vld [vmem:[%s3215_s0 + $0x80] sm:$0xff]   ;;  %v1819_v22 = vunpack.c.h.bf16 %v2068_v7  ;;  %v2084_v24 = vld [vmem:[%s3215_s0 + $0x88] sm:$0xff]  }
   0x4   :  { %v326_v8 = vsel %vm277_vm0, %v1846_v2, 0.0  ;;  %v329_v10 = vsel %vm277_vm0, %v1847_v4, 0.0  ;;  %v332_v15 = vsel %vm277_vm0, %v1850_v12, 0.0  ;;  %v1879_v17 = vunpack.c.h.bf16 %v2083_v14  ;;  %v2091_v23 = vld [vmem:[%s3215_s0 + $0xc0] sm:$0xff]  }
   0x5   :  { %v278_v9 = vsel %vm277_vm0, %v1814_v3, 0.0  ;;  %327 = vadd.xlane.f32.xlu1 %v326_v8  ;;  %v281_v11 = vsel %vm277_vm0, %v1815_v5, 0.0  ;;  %v284_v16 = vsel %vm277_vm0, %v1818_v13, 0.0  ;;  %v1878_v18 = vunpack.c.l.bf16 %v2083_v14 }
   0x6   :  { %279 = vadd.xlane.f32.xlu0 %v278_v9  ;;  %v377_v19 = vsel %vm277_vm0, %v1879_v17, 0.0 }
   0x7   :  { %v374_v20 = vsel %vm277_vm0, %v1878_v18, 0.0 }
   0x9   :  { %330 = vadd.xlane.f32.xlu1 %v329_v10 }
   0xa   :  { %282 = vadd.xlane.f32.xlu0 %v281_v11 }
   0xd   :  { %333 = vadd.xlane.f32.xlu1 %v332_v15 }
   0xe   :  { %285 = vadd.xlane.f32.xlu0 %v284_v16 }
   0xf   :  { %10 = vsyncpa [#allocation3], 0  ;;  %v335_v25 = vsel %vm277_vm0, %v1851_v21, 0.0  ;;  %v287_v26 = vsel %vm277_vm0, %v1819_v22, 0.0  ;;  %v1910_v27 = vunpack.c.l.bf16 %v2091_v23  ;;  %v1882_v28 = vunpack.c.l.bf16 %v2084_v24  ;;  %v2069_v29 = vld [vmem:[%s3215_s0 + $0x10] sm:$0xff]   ;;  %v2099_v39 = vld [vmem:[%s3215_s0 + $0x100] sm:$0xff]  }
  0x10   :  { %v1822_v32 = vunpack.c.l.bf16 %v2069_v29  ;;  %v1911_v33 = vunpack.c.h.bf16 %v2091_v23  ;;  %v2077_v34 = vld [vmem:[%s3215_s0 + $0x50] sm:$0xff]   ;;  %v1883_v37 = vunpack.c.h.bf16 %v2084_v24  ;;  %v2092_v40 = vld [vmem:[%s3215_s0 + $0xc8] sm:$0xff]   ;;  %v1942_v43 = vunpack.c.l.bf16 %v2099_v39  ;;  %v2107_v59 = vld [vmem:[%s3215_s0 + $0x140] sm:$0xff]  }
  0x11   :  { %378 = vadd.xlane.f32.xlu1 %v377_v19  ;;  %v422_v30 = vsel %vm277_vm0, %v1910_v27, 0.0  ;;  %v380_v31 = vsel %vm277_vm0, %v1882_v28, 0.0  ;;  %v1854_v38 = vunpack.c.l.bf16 %v2077_v34  ;;  %v1914_v44 = vunpack.c.l.bf16 %v2092_v40  ;;  %v2085_v49 = vld [vmem:[%s3215_s0 + $0x90] sm:$0xff]   ;;  %v2100_v54 = vld [vmem:[%s3215_s0 + $0x108] sm:$0xff]   ;;  %v2078_v0 = vld [vmem:[%s3215_s0 + $0x58] sm:$0xff]  }
  0x12   :  { %375 = vadd.xlane.f32.xlu0 %v374_v20  ;;  %v290_v35 = vsel %vm277_vm0, %v1822_v32, 0.0  ;;  %v425_v36 = vsel %vm277_vm0, %v1911_v33, 0.0  ;;  %v383_v41 = vsel %vm277_vm0, %v1883_v37, 0.0  ;;  %v470_v45 = vsel %vm277_vm0, %v1942_v43, 0.0  ;;  %v2070_v1 = vld [vmem:[%s3215_s0 + $0x18] sm:$0xff]   ;;  %v2093_v6 = vld [vmem:[%s3215_s0 + $0xd0] sm:$0xff]  }
  0x13   :  { %v338_v42 = vsel %vm277_vm0, %v1854_v38, 0.0  ;;  %v428_v46 = vsel %vm277_vm0, %v1914_v44, 0.0  ;;  %v1823_v47 = vunpack.c.h.bf16 %v2069_v29  ;;  %v1943_v48 = vunpack.c.h.bf16 %v2099_v39  ;;  %v2108_v11 = vld [vmem:[%s3215_s0 + $0x148] sm:$0xff]   ;;  %v2115_v16 = vld [vmem:[%s3215_s0 + $0x180] sm:$0xff]  }
  0x14   :  { %v1886_v52 = vunpack.c.l.bf16 %v2085_v49  ;;  %v1855_v53 = vunpack.c.h.bf16 %v2077_v34  ;;  %v1946_v57 = vunpack.c.l.bf16 %v2100_v54  ;;  %v1915_v58 = vunpack.c.h.bf16 %v2092_v40 }
  0x15   :  { %336 = vadd.xlane.f32.xlu1 %v335_v25  ;;  %v293_v50 = vsel %vm277_vm0, %v1823_v47, 0.0  ;;  %v473_v51 = vsel %vm277_vm0, %v1943_v48, 0.0  ;;  %v1975_v62 = vunpack.c.h.bf16 %v2107_v59  ;;  %v1974_v63 = vunpack.c.l.bf16 %v2107_v59  ;;  %v2086_v25 = vld [vmem:[%s3215_s0 + $0x98] sm:$0xff]  }
  0x16   :  { %288 = vadd.xlane.f32.xlu0 %v287_v26  ;;  %v386_v55 = vsel %vm277_vm0, %v1886_v52, 0.0  ;;  %v341_v56 = vsel %vm277_vm0, %v1855_v53, 0.0  ;;  %v476_v60 = vsel %vm277_vm0, %v1946_v57, 0.0  ;;  %v431_v61 = vsel %vm277_vm0, %v1915_v58, 0.0 }
  0x17   :  { %v521_v2 = vsel %vm277_vm0, %v1975_v62, 0.0  ;;  %v518_v3 = vsel %vm277_vm0, %v1974_v63, 0.0  ;;  %v1858_v4 = vunpack.c.l.bf16 %v2078_v0  ;;  %v1826_v5 = vunpack.c.l.bf16 %v2070_v1 }
  0x18   :  { %v1918_v9 = vunpack.c.l.bf16 %v2093_v6  ;;  %v1887_v10 = vunpack.c.h.bf16 %v2085_v49  ;;  %v1978_v14 = vunpack.c.l.bf16 %v2108_v11  ;;  %v1947_v15 = vunpack.c.h.bf16 %v2100_v54 }
  0x19   :  { %423 = vadd.xlane.f32.xlu1 %v422_v30  ;;  %v344_v7 = vsel %vm277_vm0, %v1858_v4, 0.0  ;;  %v296_v8 = vsel %vm277_vm0, %v1826_v5, 0.0  ;;  %v2007_v19 = vunpack.c.h.bf16 %v2115_v16  ;;  %v2006_v20 = vunpack.c.l.bf16 %v2115_v16  ;;  %v2101_v30 = vld [vmem:[%s3215_s0 + $0x110] sm:$0xff]  }
  0x1a   :  { %381 = vadd.xlane.f32.xlu0 %v380_v31  ;;  %v434_v12 = vsel %vm277_vm0, %v1918_v9, 0.0  ;;  %v389_v13 = vsel %vm277_vm0, %v1887_v10, 0.0  ;;  %v524_v17 = vsel %vm277_vm0, %v1978_v14, 0.0  ;;  %v479_v18 = vsel %vm277_vm0, %v1947_v15, 0.0 }
  0x1b   :  { %v569_v21 = vsel %vm277_vm0, %v2007_v19, 0.0  ;;  %v566_v22 = vsel %vm277_vm0, %v2006_v20, 0.0  ;;  %v1859_v23 = vunpack.c.h.bf16 %v2078_v0  ;;  %v1827_v24 = vunpack.c.h.bf16 %v2070_v1 }
  0x1c   :  { %v1919_v28 = vunpack.c.h.bf16 %v2093_v6  ;;  %v1890_v29 = vunpack.c.l.bf16 %v2086_v25  ;;  %v1979_v33 = vunpack.c.h.bf16 %v2108_v11  ;;  %v1950_v34 = vunpack.c.l.bf16 %v2101_v30 }
  0x1d   :  { %291 = vadd.xlane.f32.xlu1 %v290_v35  ;;  %v347_v26 = vsel %vm277_vm0, %v1859_v23, 0.0  ;;  %v299_v27 = vsel %vm277_vm0, %v1827_v24, 0.0  ;;  %v2123_v35 = vld [vmem:[%s3215_s0 + $0x1c0] sm:$0xff]   ;;  %v1891_v49 = vunpack.c.h.bf16 %v2086_v25  ;;  %v1951_v54 = vunpack.c.h.bf16 %v2101_v30 }
  0x1e   :  { %426 = vadd.xlane.f32.xlu0 %v425_v36  ;;  %v437_v31 = vsel %vm277_vm0, %v1919_v28, 0.0  ;;  %v392_v32 = vsel %vm277_vm0, %v1890_v29, 0.0  ;;  %v2116_v36 = vld [vmem:[%s3215_s0 + $0x188] sm:$0xff]   ;;  %v527_v37 = vsel %vm277_vm0, %v1979_v33, 0.0  ;;  %v482_v38 = vsel %vm277_vm0, %v1950_v34, 0.0 }
  0x1f   :  { %v2038_v39 = vunpack.c.l.bf16 %v2123_v35  ;;  %v2010_v40 = vunpack.c.l.bf16 %v2116_v36  ;;  %v395_v52 = vsel %vm277_vm0, %v1891_v49, 0.0  ;;  %v485_v57 = vsel %vm277_vm0, %v1951_v54, 0.0 }
  0x20   :  { %v2011_v59 = vunpack.c.h.bf16 %v2116_v36  ;;  %vm953_vm1 = vcmask 130112   ;;  %vm960_vm2 = vcmask 195712   ;;  %vm967_vm3 = vcmask 261312  }
  0x21   :  { %384 = vadd.xlane.f32.xlu1 %v383_v41  ;;  %v2071_v41 = vld [vmem:[%s3215_s0 + $0x20] sm:$0xff]   ;;  %v572_v43 = vsel %vm277_vm0, %v2010_v40, 0.0  ;;  %vm974_vm4 = vcmask 326912   ;;  %vm981_vm5 = vcmask 392512   ;;  %vm988_vm6 = vcmask 458112  }
  0x22   :  { %339 = vadd.xlane.f32.xlu0 %v338_v42  ;;  %v614_v42 = vsel %vm277_vm0, %v2038_v39, 0.0  ;;  %v1830_v44 = vunpack.c.l.bf16 %v2071_v41  ;;  %v575_v62 = vsel %vm277_vm0, %v2011_v59, 0.0  ;;  %v1831_v0 = vunpack.c.h.bf16 %v2071_v41  ;;  %v2517_v59 = vld [vmem:[%s3215_s0 + $0x30] sm:$0xff]  }
  0x23   :  { %vm995_vm7 = vcmask 523712   ;;  %vm1002_vm8 = vcmask 589312   ;;  %vm1009_vm9 = vcmask 654912   ;;  %vm1016_vm10 = vcmask 720512  }
  0x24   :  { %v302_v47 = vsel %vm277_vm0, %v1830_v44, 0.0  ;;  %vm2284_vm11 = vmmov 0   ;;  %vm1023_vm12 = vcmask 786112   ;;  %vm1030_vm13 = vcmask 851712  }
  0x25   :  { %471 = vadd.xlane.f32.xlu1 %v470_v45  ;;  %v2039_v45 = vunpack.c.h.bf16 %v2123_v35  ;;  %vm1037_vm14 = vcmask 917312   ;;  %vm1044_vm15 = vcmask 982912  }
  0x26   :  { %429 = vadd.xlane.f32.xlu0 %v428_v46  ;;  %v2079_v46 = vld [vmem:[%s3215_s0 + $0x60] sm:$0xff]  }
  0x27   :  { %v617_v48 = vsel %vm277_vm0, %v2039_v45, 0.0  ;;  %v1863_v6 = vunpack.c.h.bf16 %v2079_v46 }
  0x29   :  { %294 = vadd.xlane.f32.xlu1 %v293_v50  ;;  %v1862_v50 = vunpack.c.l.bf16 %v2079_v46  ;;  %v353_v9 = vsel %vm277_vm0, %v1863_v6, 0.0 }
  0x2a   :  { %474 = vadd.xlane.f32.xlu0 %v473_v51  ;;  %v2094_v51 = vld [vmem:[%s3215_s0 + $0xd8] sm:$0xff]  }
  0x2b   :  { %v350_v53 = vsel %vm277_vm0, %v1862_v50, 0.0  ;;  %v1923_v11 = vunpack.c.h.bf16 %v2094_v51 }
  0x2d   :  { %387 = vadd.xlane.f32.xlu1 %v386_v55  ;;  %v1922_v55 = vunpack.c.l.bf16 %v2094_v51  ;;  %v443_v14 = vsel %vm277_vm0, %v1923_v11, 0.0 }
  0x2e   :  { %342 = vadd.xlane.f32.xlu0 %v341_v56  ;;  %v2109_v56 = vld [vmem:[%s3215_s0 + $0x150] sm:$0xff]  }
  0x2f   :  { %v440_v58 = vsel %vm277_vm0, %v1922_v55, 0.0  ;;  %v1983_v16 = vunpack.c.h.bf16 %v2109_v56 }
  0x31   :  { %477 = vadd.xlane.f32.xlu1 %v476_v60  ;;  %v1982_v60 = vunpack.c.l.bf16 %v2109_v56  ;;  %v533_v19 = vsel %vm277_vm0, %v1983_v16, 0.0 }
  0x32   :  { %432 = vadd.xlane.f32.xlu0 %v431_v61  ;;  %v2124_v61 = vld [vmem:[%s3215_s0 + $0x1c8] sm:$0xff]  }
  0x33   :  { %v530_v63 = vsel %vm277_vm0, %v1982_v60, 0.0  ;;  %v2042_v1 = vunpack.c.l.bf16 %v2124_v61 }
  0x35   :  { %522 = vadd.xlane.f32.xlu1 %v521_v2  ;;  %v2087_v2 = vld [vmem:[%s3215_s0 + $0xa0] sm:$0xff]   ;;  %v620_v4 = vsel %vm277_vm0, %v2042_v1, 0.0 }
  0x36   :  { %519 = vadd.xlane.f32.xlu0 %v518_v3  ;;  %v305_v3 = vsel %vm277_vm0, %v1831_v0, 0.0  ;;  %v1894_v5 = vunpack.c.l.bf16 %v2087_v2  ;;  %v1895_v25 = vunpack.c.h.bf16 %v2087_v2  ;;  %v1838_v2 = vunpack.c.l.bf16 %v2517_v59 }
  0x38   :  { %v401_v28 = vsel %vm277_vm0, %v1895_v25, 0.0 }
  0x39   :  { %345 = vadd.xlane.f32.xlu1 %v344_v7  ;;  %v2102_v7 = vld [vmem:[%s3215_s0 + $0x118] sm:$0xff]  }
  0x3a   :  { %297 = vadd.xlane.f32.xlu0 %v296_v8  ;;  %v398_v8 = vsel %vm277_vm0, %v1894_v5, 0.0  ;;  %v1954_v10 = vunpack.c.l.bf16 %v2102_v7  ;;  %v1955_v30 = vunpack.c.h.bf16 %v2102_v7 }
  0x3c   :  { %v491_v33 = vsel %vm277_vm0, %v1955_v30, 0.0 }
  0x3d   :  { %435 = vadd.xlane.f32.xlu1 %v434_v12  ;;  %v2117_v12 = vld [vmem:[%s3215_s0 + $0x190] sm:$0xff]  }
  0x3e   :  { %390 = vadd.xlane.f32.xlu0 %v389_v13  ;;  %v488_v13 = vsel %vm277_vm0, %v1954_v10, 0.0  ;;  %v2014_v15 = vunpack.c.l.bf16 %v2117_v12  ;;  %v2015_v35 = vunpack.c.h.bf16 %v2117_v12  ;;  %v314_v12 = vsel %vm277_vm0, %v1838_v2, 0.0 }
  0x41   :  { %525 = vadd.xlane.f32.xlu1 %v524_v17  ;;  %v2072_v17 = vld [vmem:[%s3215_s0 + $0x28] sm:$0xff]  }
  0x42   :  { %480 = vadd.xlane.f32.xlu0 %v479_v18  ;;  %v578_v18 = vsel %vm277_vm0, %v2014_v15, 0.0  ;;  %v1834_v20 = vunpack.c.l.bf16 %v2072_v17  ;;  %v1835_v40 = vunpack.c.h.bf16 %v2072_v17 }
  0x44   :  { %v308_v23 = vsel %vm277_vm0, %v1834_v20, 0.0 }
  0x45   :  { %570 = vadd.xlane.f32.xlu1 %v569_v21  ;;  %v2043_v21 = vunpack.c.h.bf16 %v2124_v61 }
  0x46   :  { %567 = vadd.xlane.f32.xlu0 %v566_v22  ;;  %v2080_v22 = vld [vmem:[%s3215_s0 + $0x68] sm:$0xff]  }
  0x47   :  { %v623_v24 = vsel %vm277_vm0, %v2043_v21, 0.0  ;;  %v1867_v46 = vunpack.c.h.bf16 %v2080_v22 }
  0x49   :  { %348 = vadd.xlane.f32.xlu1 %v347_v26  ;;  %v1866_v26 = vunpack.c.l.bf16 %v2080_v22  ;;  %v359_v49 = vsel %vm277_vm0, %v1867_v46, 0.0 }
  0x4a   :  { %300 = vadd.xlane.f32.xlu0 %v299_v27  ;;  %v2095_v27 = vld [vmem:[%s3215_s0 + $0xe0] sm:$0xff]  }
  0x4b   :  { %v356_v29 = vsel %vm277_vm0, %v1866_v26, 0.0  ;;  %v1927_v51 = vunpack.c.h.bf16 %v2095_v27 }
  0x4d   :  { %438 = vadd.xlane.f32.xlu1 %v437_v31  ;;  %v1926_v31 = vunpack.c.l.bf16 %v2095_v27  ;;  %v449_v55 = vsel %vm277_vm0, %v1927_v51, 0.0 }
  0x4e   :  { %393 = vadd.xlane.f32.xlu0 %v392_v32  ;;  %v2110_v32 = vld [vmem:[%s3215_s0 + $0x158] sm:$0xff]  }
  0x4f   :  { %v446_v34 = vsel %vm277_vm0, %v1926_v31, 0.0  ;;  %v1986_v36 = vunpack.c.l.bf16 %v2110_v32 }
  0x51   :  { %528 = vadd.xlane.f32.xlu1 %v527_v37  ;;  %v2125_v37 = vld [vmem:[%s3215_s0 + $0x1d0] sm:$0xff]   ;;  %v536_v39 = vsel %vm277_vm0, %v1986_v36, 0.0 }
  0x52   :  { %483 = vadd.xlane.f32.xlu0 %v482_v38  ;;  %v581_v38 = vsel %vm277_vm0, %v2015_v35, 0.0  ;;  %v2046_v41 = vunpack.c.l.bf16 %v2125_v37 }
  0x54   :  { %v626_v44 = vsel %vm277_vm0, %v2046_v41, 0.0 }
  0x55   :  { %615 = vadd.xlane.f32.xlu1 %v614_v42  ;;  %v2088_v42 = vld [vmem:[%s3215_s0 + $0xa8] sm:$0xff]  }
  0x56   :  { %573 = vadd.xlane.f32.xlu0 %v572_v43  ;;  %v311_v43 = vsel %vm277_vm0, %v1835_v40, 0.0  ;;  %v1898_v45 = vunpack.c.l.bf16 %v2088_v42 }
  0x59   :  { %303 = vadd.xlane.f32.xlu1 %v302_v47  ;;  %v2499_v47 = vld [vmem:[%s3215_s0 + $0x120] sm:$0xff]  }
  0x5a   :  { %618 = vadd.xlane.f32.xlu0 %v617_v48  ;;  %v404_v48 = vsel %vm277_vm0, %v1898_v45, 0.0  ;;  %v1958_v50 = vunpack.c.l.bf16 %v2499_v47 }
  0x5c   :  { %v494_v54 = vsel %vm277_vm0, %v1958_v50, 0.0 }
  0x5d   :  { %396 = vadd.xlane.f32.xlu1 %v395_v52  ;;  %v942_v52 = vlaneseq }
  0x5e   :  { %351 = vadd.xlane.f32.xlu0 %v350_v53  ;;  %v2507_v53 = vld [vmem:[%s3215_s0 + $0x198] sm:$0xff]  }
  0x5f   :  { %v2018_v56 = vunpack.c.l.bf16 %v2507_v53  ;;  %v2519_v60 = vshrl.u32 %v942_v52, 7 }
  0x61   :  { %486 = vadd.xlane.f32.xlu1 %v485_v57  ;;  %v1987_v57 = vunpack.c.h.bf16 %v2110_v32  ;;  %v584_v0 = vsel %vm277_vm0, %v2018_v56, 0.0  ;;  %v1839_v56 = vunpack.c.h.bf16 %v2517_v59 }
  0x62   :  { %441 = vadd.xlane.f32.xlu0 %v440_v58  ;;  %v2512_v58 = vand.u32 127, %v942_v52 }
  0x63   :  { %v539_v1 = vsel %vm277_vm0, %v1987_v57, 0.0 }
  0x64   :  { %v948_v61 = vadd.s32 4294967288, %v2512_v58  ;;  %v2532_v5 = vsub.s32 %v2512_v58, %v2519_v60  ;;  %v955_v7 = vadd.s32 4294967280, %v2512_v58  ;;  %v969_v59 = vadd.s32 4294967264, %v2512_v58 }
  0x65   :  { %576 = vadd.xlane.f32.xlu1 %v575_v62 }
  0x66   :  { %531 = vadd.xlane.f32.xlu0 %v530_v63  ;;  %v2548_v20 = vsub.s32 %v955_v7, %v2519_v60  ;;  %v317_v7 = vsel %vm277_vm0, %v1839_v56, 0.0 }
  0x69   :  { %306 = vadd.xlane.f32.xlu1 %v305_v3  ;;  %v2047_v3 = vunpack.c.h.bf16 %v2125_v37  ;;  %v962_v37 = vadd.s32 4294967272, %v2512_v58 }
  0x6a   :  { %621 = vadd.xlane.f32.xlu0 %v620_v4  ;;  %v2528_v4 = vld [vmem:[%s3215_s0 + $0x70] sm:$0xff]  }
  0x6b   :  { %v1870_v15 = vunpack.c.l.bf16 %v2528_v4  ;;  %v2581_v51 = vsub.s32 %v962_v37, %v2519_v60 }
  0x6d   :  { %399 = vadd.xlane.f32.xlu1 %v398_v8  ;;  %v362_v27 = vsel %vm277_vm0, %v1870_v15, 0.0  ;;  %v2605_v15 = vld [vmem:[%s3215_s0 + $0x128] sm:$0xff]  }
  0x6e   :  { %354 = vadd.xlane.f32.xlu0 %v353_v9  ;;  %v2536_v9 = vsub.s32 %v948_v61, %v2519_v60 }
  0x71   :  { %489 = vadd.xlane.f32.xlu1 %v488_v13  ;;  %v629_v13 = vsel %vm277_vm0, %v2047_v3, 0.0 }
  0x72   :  { %444 = vadd.xlane.f32.xlu0 %v443_v14  ;;  %v1899_v14 = vunpack.c.h.bf16 %v2088_v42  ;;  %v2019_v42 = vunpack.c.h.bf16 %v2507_v53 }
  0x74   :  { %v407_v26 = vsel %vm277_vm0, %v1899_v14, 0.0 }
  0x75   :  { %579 = vadd.xlane.f32.xlu1 %v578_v18  ;;  %v2544_v18 = vld [vmem:[%s3215_s0 + $0xe8] sm:$0xff]  }
  0x76   :  { %534 = vadd.xlane.f32.xlu0 %v533_v19 }
  0x79   :  { %309 = vadd.xlane.f32.xlu1 %v308_v23 }
  0x7a   :  { %624 = vadd.xlane.f32.xlu0 %v623_v24 }
  0x7d   :  { %402 = vadd.xlane.f32.xlu1 %v401_v28  ;;  %v1959_v28 = vunpack.c.h.bf16 %v2499_v47 }
  0x7e   :  { %357 = vadd.xlane.f32.xlu0 %v356_v29  ;;  %v1930_v29 = vunpack.c.l.bf16 %v2544_v18 }
  0x7f   :  { %v497_v40 = vsel %vm277_vm0, %v1959_v28, 0.0 }
  0x80   :  { %v452_v41 = vsel %vm277_vm0, %v1930_v29, 0.0  ;;  %v2619_v29 = vld [vmem:[%s3215_s0 + $0x1a0] sm:$0xff]  }
  0x81   :  { %492 = vadd.xlane.f32.xlu1 %v491_v33  ;;  %v2022_v37 = vunpack.c.l.bf16 %v2619_v29 }
  0x82   :  { %447 = vadd.xlane.f32.xlu0 %v446_v34  ;;  %v2562_v34 = vld [vmem:[%s3215_s0 + $0x160] sm:$0xff]  }
  0x85   :  { %582 = vadd.xlane.f32.xlu1 %v581_v38 }
  0x86   :  { %537 = vadd.xlane.f32.xlu0 %v536_v39 }
  0x89   :  { %312 = vadd.xlane.f32.xlu1 %v311_v43  ;;  %v1990_v43 = vunpack.c.l.bf16 %v2562_v34 }
  0x8a   :  { %627 = vadd.xlane.f32.xlu0 %v626_v44 }
  0x8d   :  { %405 = vadd.xlane.f32.xlu1 %v404_v48  ;;  %v2576_v48 = vld [vmem:[%s3215_s0 + $0x1d8] sm:$0xff]  }
  0x8e   :  { %360 = vadd.xlane.f32.xlu0 %v359_v49  ;;  %v2050_v57 = vunpack.c.l.bf16 %v2576_v48 }
  0x91   :  { %495 = vadd.xlane.f32.xlu1 %v494_v54  ;;  %v587_v54 = vsel %vm277_vm0, %v2019_v42, 0.0 }
  0x92   :  { %450 = vadd.xlane.f32.xlu0 %v449_v55  ;;  %v328_v62 = vpop.xlane.xlu1 %327  ;;  %v542_v55 = vsel %vm277_vm0, %v1990_v43, 0.0  ;;  %v2633_v43 = vld [vmem:[%s3215_s0 + $0x38] sm:$0xff]  }
  0x93   :  { %v280_v63 = vpop.xlane.xlu0 %279  ;;  %v679_v6 = vmul.f32 0.015625, %v328_v62 }
  0x94   :  { %v663_v8 = vmul.f32 0.015625, %v280_v63 }
  0x95   :  { %585 = vadd.xlane.f32.xlu1 %v584_v0  ;;  %v1056_v19 = vrot.slane %v679_v6, %v2532_v5  ;;  %v2591_v0 = vld [vmem:[%s3215_s0 + $0xb0] sm:$0xff]  }
  0x96   :  { %540 = vadd.xlane.f32.xlu0 %v539_v1  ;;  %v331_v10 = vpop.xlane.xlu1 %330  ;;  %v947_v21 = vrot.slane %v663_v8, %v2532_v5  ;;  %v632_v8 = vsel %vm277_vm0, %v2050_v57, 0.0  ;;  %v2647_v57 = vld [vmem:[%s3215_s0 + $0x78] sm:$0xff]  }
  0x97   :  { %v283_v11 = vpop.xlane.xlu0 %282  ;;  %v680_v16 = vmul.f32 0.015625, %v331_v10  ;;  %v1902_v10 = vunpack.c.l.bf16 %v2591_v0 }
  0x98   :  { %v664_v17 = vmul.f32 0.015625, %v283_v11  ;;  %v1871_v11 = vunpack.c.h.bf16 %v2528_v4 }
  0x99   :  { %v1060_v22 = vrot.slane %v680_v16, %v2536_v9  ;;  %315 = vadd.xlane.f32.xlu1 %v314_v12 }
  0x9a   :  { %v952_v23 = vrot.slane %v664_v17, %v2536_v9  ;;  %630 = vadd.xlane.f32.xlu0 %v629_v13  ;;  %v334_v24 = vpop.xlane.xlu1 %333 }
  0x9b   :  { %v286_v25 = vpop.xlane.xlu0 %285  ;;  %v1061_v30 = vsel %vm953_vm1, %v1060_v22, %v1056_v19  ;;  %v681_v32 = vmul.f32 0.015625, %v334_v24  ;;  %v2609_v19 = vsub.s32 %v969_v59, %v2519_v60  ;;  %v410_v22 = vsel %vm277_vm0, %v1902_v10, 0.0 }
  0x9c   :  { %v954_v31 = vsel %vm953_vm1, %v952_v23, %v947_v21  ;;  %v665_v33 = vmul.f32 0.015625, %v286_v25  ;;  %v365_v23 = vsel %vm277_vm0, %v1871_v11, 0.0  ;;  %v1962_v24 = vunpack.c.l.bf16 %v2605_v15  ;;  %v2661_v11 = vld [vmem:[%s3215_s0 + $0xf0] sm:$0xff]  }
  0x9d   :  { %v1065_v35 = vrot.slane %v681_v32, %v2548_v20  ;;  %408 = vadd.xlane.f32.xlu1 %v407_v26  ;;  %v1931_v25 = vunpack.c.h.bf16 %v2544_v18 }
  0x9e   :  { %v959_v36 = vrot.slane %v665_v33, %v2548_v20  ;;  %363 = vadd.xlane.f32.xlu0 %v362_v27  ;;  %v379_v38 = vpop.xlane.xlu1 %378 }
  0x9f   :  { %v376_v39 = vpop.xlane.xlu0 %375  ;;  %v1066_v44 = vsel %vm960_vm2, %v1065_v35, %v1061_v30  ;;  %v696_v46 = vmul.f32 0.015625, %v379_v38  ;;  %v500_v35 = vsel %vm277_vm0, %v1962_v24, 0.0  ;;  %v1991_v38 = vunpack.c.h.bf16 %v2562_v34 }
  0xa0   :  { %v961_v45 = vsel %vm960_vm2, %v959_v36, %v954_v31  ;;  %v695_v47 = vmul.f32 0.015625, %v376_v39  ;;  %v455_v36 = vsel %vm277_vm0, %v1931_v25, 0.0 }
  0xa1   :  { %v1139_v49 = vrot.slane %v696_v46, %v2536_v9  ;;  %498 = vadd.xlane.f32.xlu1 %v497_v40  ;;  %v976_v46 = vadd.s32 4294967256, %v2512_v58 }
  0xa2   :  { %v1135_v50 = vrot.slane %v695_v47, %v2532_v5  ;;  %453 = vadd.xlane.f32.xlu0 %v452_v41  ;;  %v337_v52 = vpop.xlane.xlu1 %336 }
  0xa3   :  { %v289_v53 = vpop.xlane.xlu0 %288  ;;  %v682_v62 = vmul.f32 0.015625, %v337_v52  ;;  %v1842_v52 = vunpack.c.l.bf16 %v2633_v43 }
  0xa4   :  { %v1140_v61 = vsel %vm953_vm1, %v1139_v49, %v1135_v50  ;;  %v666_v63 = vmul.f32 0.015625, %v289_v53  ;;  %v590_v49 = vsel %vm277_vm0, %v2022_v37, 0.0  ;;  %v545_v50 = vsel %vm277_vm0, %v1991_v38, 0.0 }
  0xa5   :  { %v1070_v1 = vrot.slane %v682_v62, %v2581_v51  ;;  %588 = vadd.xlane.f32.xlu1 %v587_v54  ;;  %v2051_v53 = vunpack.c.h.bf16 %v2576_v48 }
  0xa6   :  { %v966_v2 = vrot.slane %v666_v63, %v2581_v51  ;;  %543 = vadd.xlane.f32.xlu0 %v542_v55  ;;  %v424_v3 = vpop.xlane.xlu1 %423  ;;  %v2651_v63 = vsub.s32 %v976_v46, %v2519_v60 }
  0xa7   :  { %v382_v6 = vpop.xlane.xlu0 %381  ;;  %v1071_v12 = vsel %vm967_vm3, %v1070_v1, %v1066_v44  ;;  %v711_v16 = vmul.f32 0.015625, %v424_v3  ;;  %v635_v59 = vsel %vm277_vm0, %v2051_v53, 0.0  ;;  %v1903_v3 = vunpack.c.h.bf16 %v2591_v0 }
  0xa8   :  { %v968_v13 = vsel %vm967_vm3, %v966_v2, %v961_v45  ;;  %v697_v14 = vmul.f32 0.015625, %v382_v6  ;;  %v320_v2 = vsel %vm277_vm0, %v1842_v52, 0.0  ;;  %v1874_v6 = vunpack.c.l.bf16 %v2647_v57 }
  0xa9   :  { %318 = vadd.xlane.f32.xlu1 %v317_v7  ;;  %v1214_v30 = vrot.slane %v711_v16, %v2532_v5 }
  0xaa   :  { %v1144_v17 = vrot.slane %v697_v14, %v2548_v20  ;;  %633 = vadd.xlane.f32.xlu0 %v632_v8  ;;  %v292_v21 = vpop.xlane.xlu1 %291 }
  0xab   :  { %v427_v4 = vpop.xlane.xlu0 %426  ;;  %v667_v27 = vmul.f32 0.015625, %v292_v21  ;;  %v368_v21 = vsel %vm277_vm0, %v1874_v6, 0.0 }
  0xac   :  { %v1145_v26 = vsel %vm960_vm2, %v1144_v17, %v1140_v61  ;;  %v712_v28 = vmul.f32 0.015625, %v427_v4  ;;  %v413_v17 = vsel %vm277_vm0, %v1903_v3, 0.0  ;;  %v1963_v4 = vunpack.c.h.bf16 %v2605_v15 }
  0xad   :  { %v973_v31 = vrot.slane %v667_v27, %v2609_v19  ;;  %411 = vadd.xlane.f32.xlu1 %v410_v22  ;;  %v1934_v22 = vunpack.c.l.bf16 %v2661_v11  ;;  %v2677_v27 = vld [vmem:[%s3215_s0 + $0x168] sm:$0xff]   ;;  %v1875_v3 = vunpack.c.h.bf16 %v2647_v57 }
  0xae   :  { %v1218_v32 = vrot.slane %v712_v28, %v2536_v9  ;;  %366 = vadd.xlane.f32.xlu0 %v365_v23  ;;  %v385_v33 = vpop.xlane.xlu1 %384 }
  0xaf   :  { %v340_v18 = vpop.xlane.xlu0 %339  ;;  %v975_v39 = vsel %vm974_vm4, %v973_v31, %v968_v13  ;;  %v698_v41 = vmul.f32 0.015625, %v385_v33  ;;  %v458_v33 = vsel %vm277_vm0, %v1934_v22, 0.0 }
  0xb0   :  { %v1219_v40 = vsel %vm953_vm1, %v1218_v32, %v1214_v30  ;;  %v683_v42 = vmul.f32 0.015625, %v340_v18  ;;  %v503_v32 = vsel %vm277_vm0, %v1963_v4, 0.0  ;;  %v2023_v18 = vunpack.c.h.bf16 %v2619_v29 }
  0xb1   :  { %v1149_v44 = vrot.slane %v698_v41, %v2581_v51  ;;  %501 = vadd.xlane.f32.xlu1 %v500_v35  ;;  %v1994_v35 = vunpack.c.l.bf16 %v2677_v27  ;;  %v983_v29 = vadd.s32 4294967248, %v2512_v58 }
  0xb2   :  { %v1075_v45 = vrot.slane %v683_v42, %v2609_v19  ;;  %456 = vadd.xlane.f32.xlu0 %v455_v36  ;;  %v472_v34 = vpop.xlane.xlu1 %471  ;;  %v593_v46 = vsel %vm277_vm0, %v2023_v18, 0.0 }
  0xb3   :  { %v430_v47 = vpop.xlane.xlu0 %429  ;;  %v1150_v54 = vsel %vm967_vm3, %v1149_v44, %v1145_v26  ;;  %v727_v61 = vmul.f32 0.015625, %v472_v34  ;;  %v548_v34 = vsel %vm277_vm0, %v1994_v35, 0.0 }
  0xb4   :  { %v1076_v55 = vsel %vm974_vm4, %v1075_v45, %v1071_v12  ;;  %v713_v56 = vmul.f32 0.015625, %v430_v47  ;;  %v1843_v47 = vunpack.c.h.bf16 %v2633_v43  ;;  %v2713_v43 = vsub.s32 %v983_v29, %v2519_v60 }
  0xb5   :  { %591 = vadd.xlane.f32.xlu1 %v590_v49  ;;  %v1293_v12 = vrot.slane %v727_v61, %v2532_v5 }
  0xb6   :  { %v1223_v62 = vrot.slane %v713_v56, %v2548_v20  ;;  %546 = vadd.xlane.f32.xlu0 %v545_v50  ;;  %v295_v1 = vpop.xlane.xlu1 %294 }
  0xb7   :  { %v475_v48 = vpop.xlane.xlu0 %474  ;;  %v668_v8 = vmul.f32 0.015625, %v295_v1 }
  0xb8   :  { %v1224_v7 = vsel %vm960_vm2, %v1223_v62, %v1219_v40  ;;  %v728_v10 = vmul.f32 0.015625, %v475_v48  ;;  %v2692_v40 = vld [vmem:[%s3215_s0 + $0x1e0] sm:$0xff]   ;;  %v323_v48 = vsel %vm277_vm0, %v1843_v47, 0.0 }
  0xb9   :  { %v980_v13 = vrot.slane %v668_v8, %v2651_v63  ;;  %321 = vadd.xlane.f32.xlu1 %v320_v2  ;;  %v2054_v49 = vunpack.c.l.bf16 %v2692_v40 }
  0xba   :  { %v1297_v14 = vrot.slane %v728_v10, %v2536_v9  ;;  %636 = vadd.xlane.f32.xlu0 %v635_v59  ;;  %v388_v0 = vpop.xlane.xlu1 %387  ;;  %v2723_v10 = vld [vmem:[%s3215_s0 + $0x130] sm:$0xff]  }
  0xbb   :  { %v343_v16 = vpop.xlane.xlu0 %342  ;;  %v2671_v23 = vsel %vm981_vm5, %v980_v13, %v975_v39  ;;  %v699_v25 = vmul.f32 0.015625, %v388_v0  ;;  %v638_v2 = vsel %vm277_vm0, %v2054_v49, 0.0 }
  0xbc   :  { %v1298_v24 = vsel %vm953_vm1, %v1297_v14, %v1293_v12  ;;  %v684_v26 = vmul.f32 0.015625, %v343_v16  ;;  %v371_v16 = vsel %vm277_vm0, %v1875_v3, 0.0 }
  0xbd   :  { %v1154_v28 = vrot.slane %v699_v25, %v2609_v19  ;;  %414 = vadd.xlane.f32.xlu1 %v413_v17  ;;  %v1966_v17 = vunpack.c.l.bf16 %v2723_v10 }
  0xbe   :  { %v1080_v30 = vrot.slane %v684_v26, %v2651_v63  ;;  %369 = vadd.xlane.f32.xlu0 %v368_v21  ;;  %v478_v15 = vpop.xlane.xlu1 %477  ;;  %v1935_v21 = vunpack.c.h.bf16 %v2661_v11  ;;  %v2737_v26 = vld [vmem:[%s3215_s0 + $0x1a8] sm:$0xff]  }
  0xbf   :  { %v433_v31 = vpop.xlane.xlu0 %432  ;;  %v2686_v36 = vsel %vm974_vm4, %v1154_v28, %v1150_v54  ;;  %v729_v38 = vmul.f32 0.015625, %v478_v15 }
  0xc0   :  { %v1081_v37 = vsel %vm981_vm5, %v1080_v30, %v1076_v55  ;;  %v714_v39 = vmul.f32 0.015625, %v433_v31  ;;  %v2708_v55 = vld [vmem:[%s3215_s0 + $0xb8] sm:$0xff]   ;;  %v506_v31 = vsel %vm277_vm0, %v1966_v17, 0.0 }
  0xc1   :  { %v1302_v41 = vrot.slane %v729_v38, %v2548_v20  ;;  %504 = vadd.xlane.f32.xlu1 %v503_v32  ;;  %v1906_v59 = vunpack.c.l.bf16 %v2708_v55  ;;  %v461_v32 = vsel %vm277_vm0, %v1935_v21, 0.0 }
  0xc2   :  { %v1228_v42 = vrot.slane %v714_v39, %v2581_v51  ;;  %459 = vadd.xlane.f32.xlu0 %v458_v33  ;;  %v523_v44 = vpop.xlane.xlu1 %522  ;;  %v1995_v33 = vunpack.c.h.bf16 %v2677_v27 }
  0xc3   :  { %v520_v45 = vpop.xlane.xlu0 %519  ;;  %v2702_v50 = vsel %vm960_vm2, %v1302_v41, %v1298_v24  ;;  %v744_v53 = vmul.f32 0.015625, %v523_v44  ;;  %v416_v57 = vsel %vm277_vm0, %v1906_v59, 0.0 }
  0xc4   :  { %v1229_v52 = vsel %vm967_vm3, %v1228_v42, %v1224_v7  ;;  %v743_v54 = vmul.f32 0.015625, %v520_v45  ;;  %v990_v42 = vadd.s32 4294967240, %v2512_v58  ;;  %v551_v27 = vsel %vm277_vm0, %v1995_v33, 0.0 }
  0xc5   :  { %v1376_v56 = vrot.slane %v744_v53, %v2536_v9  ;;  %594 = vadd.xlane.f32.xlu1 %v593_v46  ;;  %v1907_v46 = vunpack.c.h.bf16 %v2708_v55  ;;  %v2098_v53 = vld [vmem:[%s3215_s0 + $0xf8] sm:$0xff]  }
  0xc6   :  { %v1372_v61 = vrot.slane %v743_v54, %v2532_v5  ;;  %549 = vadd.xlane.f32.xlu0 %v548_v34  ;;  %v346_v62 = vpop.xlane.xlu1 %345 }
  0xc7   :  { %v298_v1 = vpop.xlane.xlu0 %297  ;;  %v685_v7 = vmul.f32 0.015625, %v346_v62 }
  0xc8   :  { %v1377_v6 = vsel %vm953_vm1, %v1376_v56, %v1372_v61  ;;  %v669_v8 = vmul.f32 0.015625, %v298_v1  ;;  %v1967_v1 = vunpack.c.h.bf16 %v2723_v10 }
  0xc9   :  { %v1085_v12 = vrot.slane %v685_v7, %v2713_v43  ;;  %324 = vadd.xlane.f32.xlu1 %v323_v48  ;;  %v1938_v48 = vunpack.c.l.bf16 %v2098_v53 }
  0xca   :  { %v987_v13 = vrot.slane %v669_v8, %v2713_v43  ;;  %639 = vadd.xlane.f32.xlu0 %v638_v2  ;;  %v436_v14 = vpop.xlane.xlu1 %435  ;;  %v509_v10 = vsel %vm277_vm0, %v1967_v1, 0.0 }
  0xcb   :  { %v391_v0 = vpop.xlane.xlu0 %390  ;;  %v1086_v4 = vsel %vm988_vm6, %v1085_v12, %v1081_v37  ;;  %v715_v24 = vmul.f32 0.015625, %v436_v14  ;;  %v464_v14 = vsel %vm277_vm0, %v1938_v48, 0.0 }
  0xcc   :  { %v989_v22 = vsel %vm988_vm6, %v987_v13, %v2671_v23  ;;  %v700_v25 = vmul.f32 0.015625, %v391_v0  ;;  %v2026_v23 = vunpack.c.l.bf16 %v2737_v26  ;;  %v2027_v0 = vunpack.c.h.bf16 %v2737_v26 }
  0xcd   :  { %v1233_v28 = vrot.slane %v715_v24, %v2609_v19  ;;  %417 = vadd.xlane.f32.xlu1 %v416_v57 }
  0xce   :  { %v1159_v30 = vrot.slane %v700_v25, %v2651_v63  ;;  %372 = vadd.xlane.f32.xlu0 %v371_v16  ;;  %v526_v15 = vpop.xlane.xlu1 %525  ;;  %v596_v45 = vsel %vm277_vm0, %v2026_v23, 0.0  ;;  %v2128_v25 = vld [vmem:[%s3215_s0 + $0x1e8] sm:$0xff]  }
  0xcf   :  { %v481_v11 = vpop.xlane.xlu0 %480  ;;  %v1234_v18 = vsel %vm974_vm4, %v1233_v28, %v1229_v52  ;;  %v745_v37 = vmul.f32 0.015625, %v526_v15 }
  0xd0   :  { %v1160_v35 = vsel %vm981_vm5, %v1159_v30, %v2686_v36  ;;  %v730_v38 = vmul.f32 0.015625, %v481_v11  ;;  %v2055_v36 = vunpack.c.h.bf16 %v2692_v40  ;;  %v2768_v40 = vsub.s32 %v990_v42, %v2519_v60 }
  0xd1   :  { %v1381_v39 = vrot.slane %v745_v37, %v2548_v20  ;;  %507 = vadd.xlane.f32.xlu1 %v506_v31  ;;  %v599_v11 = vsel %vm277_vm0, %v2027_v0, 0.0  ;;  %v1939_v31 = vunpack.c.h.bf16 %v2098_v53  ;;  %v997_v42 = vadd.s32 4294967232, %v2512_v58 }
  0xd2   :  { %v1307_v41 = vrot.slane %v730_v38, %v2581_v51  ;;  %462 = vadd.xlane.f32.xlu0 %v461_v32  ;;  %v571_v29 = vpop.xlane.xlu1 %570  ;;  %v641_v62 = vsel %vm277_vm0, %v2055_v36, 0.0  ;;  %v2106_v38 = vld [vmem:[%s3215_s0 + $0x138] sm:$0xff]  }
  0xd3   :  { %v568_v44 = vpop.xlane.xlu0 %567  ;;  %v2756_v34 = vsel %vm960_vm2, %v1381_v39, %v1377_v6  ;;  %v760_v49 = vmul.f32 0.015625, %v571_v29  ;;  %v2113_v6 = vld [vmem:[%s3215_s0 + $0x170] sm:$0xff]   ;;  %v1971_v0 = vunpack.c.h.bf16 %v2106_v38 }
  0xd4   :  { %v2760_v47 = vsel %vm967_vm3, %v1307_v41, %v2702_v50  ;;  %v759_v52 = vmul.f32 0.015625, %v568_v44  ;;  %v419_v50 = vsel %vm277_vm0, %v1907_v46, 0.0  ;;  %v1998_v57 = vunpack.c.l.bf16 %v2113_v6 }
  0xd5   :  { %v1455_v54 = vrot.slane %v760_v49, %v2536_v9  ;;  %597 = vadd.xlane.f32.xlu1 %v596_v45  ;;  %v1999_v45 = vunpack.c.h.bf16 %v2113_v6 }
  0xd6   :  { %v1451_v56 = vrot.slane %v759_v52, %v2532_v5  ;;  %552 = vadd.xlane.f32.xlu0 %v551_v27  ;;  %v349_v55 = vpop.xlane.xlu1 %348  ;;  %v1970_v27 = vunpack.c.l.bf16 %v2106_v38  ;;  %v2121_v52 = vld [vmem:[%s3215_s0 + $0x1b0] sm:$0xff]   ;;  %v2122_v38 = vld [vmem:[%s3215_s0 + $0x1b8] sm:$0xff]  }
  0xd7   :  { %v301_v61 = vpop.xlane.xlu0 %300  ;;  %v686_v59 = vmul.f32 0.015625, %v349_v55 }
  0xd8   :  { %v1456_v2 = vsel %vm953_vm1, %v1455_v54, %v1451_v56  ;;  %v670_v3 = vmul.f32 0.015625, %v301_v61  ;;  %v2816_v56 = vsub.s32 %v997_v42, %v2519_v60 }
  0xd9   :  { %v1090_v7 = vrot.slane %v686_v59, %v2768_v40  ;;  %420 = vadd.xlane.f32.xlu1 %v419_v50  ;;  %v512_v50 = vsel %vm277_vm0, %v1970_v27, 0.0 }
  0xda   :  { %v994_v8 = vrot.slane %v670_v3, %v2768_v40  ;;  %642 = vadd.xlane.f32.xlu0 %v641_v62  ;;  %v439_v12 = vpop.xlane.xlu1 %438  ;;  %v2030_v62 = vunpack.c.l.bf16 %v2121_v52  ;;  %v2114_v3 = vld [vmem:[%s3215_s0 + $0x178] sm:$0xff]  }
  0xdb   :  { %v394_v13 = vpop.xlane.xlu0 %393  ;;  %v2783_v16 = vsel %vm995_vm7, %v1090_v7, %v1086_v4  ;;  %v716_v21 = vmul.f32 0.015625, %v439_v12  ;;  %v554_v4 = vsel %vm277_vm0, %v1998_v57, 0.0 }
  0xdc   :  { %v996_v17 = vsel %vm995_vm7, %v994_v8, %v989_v22  ;;  %v701_v24 = vmul.f32 0.015625, %v394_v13  ;;  %v2058_v22 = vunpack.c.l.bf16 %v2128_v25 }
  0xdd   :  { %v1238_v28 = vrot.slane %v716_v21, %v2651_v63  ;;  %510 = vadd.xlane.f32.xlu1 %v509_v10  ;;  %v602_v10 = vsel %vm277_vm0, %v2030_v62, 0.0 }
  0xde   :  { %v1164_v30 = vrot.slane %v701_v24, %v2713_v43  ;;  %465 = vadd.xlane.f32.xlu0 %v464_v14  ;;  %v529_v15 = vpop.xlane.xlu1 %528  ;;  %v2002_v14 = vunpack.c.l.bf16 %v2114_v3 }
  0xdf   :  { %v484_v26 = vpop.xlane.xlu0 %483  ;;  %v2794_v32 = vsel %vm981_vm5, %v1238_v28, %v1234_v18  ;;  %v746_v33 = vmul.f32 0.015625, %v529_v15  ;;  %v467_v18 = vsel %vm277_vm0, %v1939_v31, 0.0 }
  0xe0   :  { %v1165_v23 = vsel %vm988_vm6, %v1164_v30, %v1160_v35  ;;  %v731_v37 = vmul.f32 0.015625, %v484_v26  ;;  %v644_v35 = vsel %vm277_vm0, %v2058_v22, 0.0  ;;  %v515_v26 = vsel %vm277_vm0, %v1971_v0, 0.0 }
  0xe1   :  { %v1386_v39 = vrot.slane %v746_v33, %v2581_v51  ;;  %600 = vadd.xlane.f32.xlu1 %v599_v11 }
  0xe2   :  { %v1312_v41 = vrot.slane %v731_v37, %v2609_v19  ;;  %555 = vadd.xlane.f32.xlu0 %v554_v4  ;;  %v616_v29 = vpop.xlane.xlu1 %615  ;;  %v2031_v4 = vunpack.c.h.bf16 %v2121_v52 }
  0xe3   :  { %v574_v44 = vpop.xlane.xlu0 %573  ;;  %v2807_v46 = vsel %vm967_vm3, %v1386_v39, %v2756_v34  ;;  %v775_v53 = vmul.f32 0.015625, %v616_v29  ;;  %v557_v34 = vsel %vm277_vm0, %v1999_v45, 0.0  ;;  %v1004_v39 = vadd.s32 4294967224, %v2512_v58 }
  0xe4   :  { %v1313_v36 = vsel %vm974_vm4, %v1312_v41, %v2760_v47  ;;  %v761_v49 = vmul.f32 0.015625, %v574_v44  ;;  %v2059_v47 = vunpack.c.h.bf16 %v2128_v25 }
  0xe5   :  { %468 = vadd.xlane.f32.xlu1 %v467_v18  ;;  %v1530_v6 = vrot.slane %v775_v53, %v2532_v5  ;;  %v2034_v18 = vunpack.c.l.bf16 %v2122_v38  ;;  %v2870_v53 = vsub.s32 %v1004_v39, %v2519_v60 }
  0xe6   :  { %v1460_v54 = vrot.slane %v761_v49, %v2548_v20  ;;  %645 = vadd.xlane.f32.xlu0 %v644_v35  ;;  %v304_v55 = vpop.xlane.xlu1 %303  ;;  %v2003_v35 = vunpack.c.h.bf16 %v2114_v3  ;;  %v2283_v3 = vmov 0.0|0.0  }
  0xe7   :  { %v619_v61 = vpop.xlane.xlu0 %618  ;;  %v671_v48 = vmul.f32 0.015625, %v304_v55  ;;  %v792_v55 = vld [vmem:[%s3216_s1 + $0x8] sm:$0xff]  ;;  %2211 = vmatprep.subr.bf16.mxu0 %v2283_v3  ;;  %2235 = vmatprep.subr.bf16.mxu1 %v2283_v3 }
  0xe8   :  { %v2821_v1 = vsel %vm960_vm2, %v1460_v54, %v1456_v2  ;;  %v776_v59 = vmul.f32 0.015625, %v619_v61  ;;  %v647_v2 = vsel %vm277_vm0, %v2059_v47, 0.0  ;;  %v791_v54 = vld [vmem:[%s3216_s1] sm:$0xff]  ;;  %v608_v47 = vsel %vm277_vm0, %v2034_v18, 0.0 }
  0xe9   :  { %v1001_v7 = vrot.slane %v671_v48, %v2816_v56  ;;  %558 = vadd.xlane.f32.xlu1 %v557_v34  ;;  %v563_v62 = vsel %vm277_vm0, %v2003_v35, 0.0  ;;  %v2035_v48 = vunpack.c.h.bf16 %v2122_v38 }
  0xea   :  { %v1534_v8 = vrot.slane %v776_v59, %v2536_v9  ;;  %513 = vadd.xlane.f32.xlu0 %v512_v50  ;;  %v397_v12 = vpop.xlane.xlu1 %396  ;;  %v2840_v9 = vld [vmem:[%s3215_s0 + $0x1f0] sm:$0xff]  }
  0xeb   :  { %v352_v13 = vpop.xlane.xlu0 %351  ;;  %v2832_v57 = vsel %vm1002_vm8, %v1001_v7, %v996_v17  ;;  %v702_v5 = vmul.f32 0.015625, %v397_v12  ;;  %v560_v17 = vsel %vm277_vm0, %v2002_v14, 0.0  ;;  %v2062_v11 = vunpack.c.l.bf16 %v2840_v9 }
  0xec   :  { %v2835_v21 = vsel %vm953_vm1, %v1534_v8, %v1530_v6  ;;  %v687_v24 = vmul.f32 0.015625, %v352_v13  ;;  %v2063_v59 = vunpack.c.h.bf16 %v2840_v9  ;;  %v2130_v13 = vld [vmem:[%s3215_s0 + $0x1f8] sm:$0xff]   ;;  %vm1051_vm1 = vcmask 1048512  }
  0xed   :  { %v1169_v25 = vrot.slane %v702_v5, %v2768_v40  ;;  %648 = vadd.xlane.f32.xlu1 %v647_v2  ;;  %v650_v44 = vsel %vm277_vm0, %v2062_v11, 0.0  ;;  %v793_v2 = vld [vmem:[%s3216_s1 + $0x10] sm:$0xff]  ;;  %v796_v11 = vld [vmem:[%s3216_s1 + $0x28] sm:$0xff] }
  0xee   :  { %v1095_v28 = vrot.slane %v687_v24, %v2816_v56  ;;  %603 = vadd.xlane.f32.xlu0 %v602_v10  ;;  %v487_v30 = vpop.xlane.xlu1 %486  ;;  %v611_v24 = vsel %vm277_vm0, %v2035_v48, 0.0  ;;  %v653_v9 = vsel %vm277_vm0, %v2063_v59, 0.0 }
  0xef   :  { %v442_v15 = vpop.xlane.xlu0 %441  ;;  %v2848_v31 = vsel %vm995_vm7, %v1169_v25, %v1165_v23  ;;  %v732_v33 = vmul.f32 0.015625, %v487_v30  ;;  %v2066_v25 = vunpack.c.l.bf16 %v2130_v13 }
  0xf0   :  { %v2852_v22 = vsel %vm1002_vm8, %v1095_v28, %v2783_v16  ;;  %v717_v37 = vmul.f32 0.015625, %v442_v15  ;;  %v605_v16 = vsel %vm277_vm0, %v2031_v4, 0.0  ;;  %v2067_v28 = vunpack.c.h.bf16 %v2130_v13 }
  0xf1   :  { %v1317_v41 = vrot.slane %v732_v33, %v2651_v63  ;;  %561 = vadd.xlane.f32.xlu1 %v560_v17  ;;  %v656_v38 = vsel %vm277_vm0, %v2066_v25, 0.0  ;;  %v803_v25 = vld [vmem:[%s3216_s1 + $0x60] sm:$0xff] }
  0xf2   :  { %v1243_v42 = vrot.slane %v717_v37, %v2713_v43  ;;  %516 = vadd.xlane.f32.xlu0 %v515_v26  ;;  %v577_v23 = vpop.xlane.xlu1 %576  ;;  %v659_v39 = vsel %vm277_vm0, %v2067_v28, 0.0 }
  0xf3   :  { %v532_v29 = vpop.xlane.xlu0 %531  ;;  %v2863_v45 = vsel %vm981_vm5, %v1317_v41, %v1313_v36  ;;  %v762_v49 = vmul.f32 0.015625, %v577_v23 }
  0xf4   :  { %v2867_v27 = vsel %vm988_vm6, %v1243_v42, %v2794_v32  ;;  %v747_v52 = vmul.f32 0.015625, %v532_v29  ;;  %v2212_v32 = vpack.c.bf16 %v792_v55, %v791_v54 }
  0xf5   :  { %v1465_v36 = vrot.slane %v762_v49, %v2581_v51  ;;  %651 = vadd.xlane.f32.xlu1 %v650_v44  ;;  %v797_v44 = vld [vmem:[%s3216_s1 + $0x30] sm:$0xff] }
  0xf6   :  { %v1391_v61 = vrot.slane %v747_v52, %v2609_v19  ;;  %606 = vadd.xlane.f32.xlu0 %v605_v16  ;;  %v307_v34 = vpop.xlane.xlu1 %306  ;;  %2213 = vmatpush3.bf16.msra.mxu0 %v2212_v32  ;;  %v798_v16 = vld [vmem:[%s3216_s1 + $0x38] sm:$0xff]  ;;  %v799_v32 = vld [vmem:[%s3216_s1 + $0x40] sm:$0xff] }
  0xf7   :  { %v622_v50 = vpop.xlane.xlu0 %621  ;;  %v2887_v6 = vsel %vm967_vm3, %v1465_v36, %v2821_v1  ;;  %v672_v8 = vmul.f32 0.015625, %v307_v34  ;;  %2214 = vmatprep.subr.bf16.mxu0 %v2283_v3  ;;  %v794_v1 = vld [vmem:[%s3216_s1 + $0x18] sm:$0xff]  ;;  %v2221_v35 = vpack.c.bf16 %v798_v16, %v797_v44  ;;  %v800_v34 = vld [vmem:[%s3216_s1 + $0x48] sm:$0xff] }
  0xf8   :  { %v2891_v7 = vsel %vm974_vm4, %v1391_v61, %v2807_v46  ;;  %v777_v12 = vmul.f32 0.015625, %v622_v50  ;;  %v2215_v14 = vpack.c.bf16 %v794_v1, %v793_v2  ;;  %v801_v2 = vld [vmem:[%s3216_s1 + $0x50] sm:$0xff]  ;;  %v802_v1 = vld [vmem:[%s3216_s1 + $0x58] sm:$0xff] }
  0xf9   :  { %v1008_v46 = vrot.slane %v672_v8, %v2870_v53  ;;  %609 = vadd.xlane.f32.xlu1 %v608_v47 }
  0xfa   :  { %v1539_v10 = vrot.slane %v777_v12, %v2548_v20  ;;  %564 = vadd.xlane.f32.xlu0 %v563_v62  ;;  %v400_v0 = vpop.xlane.xlu1 %399  ;;  %2216 = vmatpush3.bf16.msra.mxu0 %v2215_v14  ;;  %v795_v20 = vld [vmem:[%s3216_s1 + $0x20] sm:$0xff] }
  0xfb   :  { %v355_v5 = vpop.xlane.xlu0 %354  ;;  %v1010_v30 = vsel %vm1009_vm9, %v1008_v46, %v2832_v57  ;;  %v703_v17 = vmul.f32 0.015625, %v400_v0  ;;  %2217 = vmatprep.subr.bf16.mxu0 %v2283_v3 }
  0xfc   :  { %v1540_v15 = vsel %vm960_vm2, %v1539_v10, %v2835_v21  ;;  %v688_v26 = vmul.f32 0.015625, %v355_v5  ;;  %v2218_v21 = vpack.c.bf16 %v796_v11, %v795_v20  ;;  %v2227_v10 = vpack.c.bf16 %v802_v1, %v801_v2 }
  0xfd   :  { %v1174_v4 = vrot.slane %v703_v17, %v2816_v56  ;;  %612 = vadd.xlane.f32.xlu1 %v611_v24  ;;  %vm1606_vm2 = vcmask 1041409  }
  0xfe   :  { %v1100_v57 = vrot.slane %v688_v26, %v2870_v53  ;;  %654 = vadd.xlane.f32.xlu0 %v653_v9  ;;  %v490_v33 = vpop.xlane.xlu1 %489  ;;  %2219 = vmatpush3.bf16.msra.mxu0 %v2218_v21  ;;  %v1018_v21 = vadd.s32 4294967208, %v2512_v58 }
  0xff   :  { %v445_v37 = vpop.xlane.xlu0 %444  ;;  %v1175_v41 = vsel %vm1002_vm8, %v1174_v4, %v2848_v31  ;;  %v733_v23 = vmul.f32 0.015625, %v490_v33  ;;  %2220 = vmatprep.subr.bf16.mxu0 %v2283_v3  ;;  %v805_v33 = vld [vmem:[%s3216_s1 + $0x70] sm:$0xff] }
 0x100   :  { %v1101_v42 = vsel %vm1009_vm9, %v1100_v57, %v2852_v22  ;;  %v718_v29 = vmul.f32 0.015625, %v445_v37  ;;  %v1011_v22 = vadd.s32 4294967216, %v2512_v58  ;;  %v806_v37 = vld [vmem:[%s3216_s1 + $0x78] sm:$0xff] }
 0x101   :  { %v1322_v18 = vrot.slane %v733_v23, %v2713_v43  ;;  %660 = vadd.xlane.f32.xlu1 %v659_v39 }
 0x102   :  { %v1248_v31 = vrot.slane %v718_v29, %v2768_v40  ;;  %657 = vadd.xlane.f32.xlu0 %v656_v38  ;;  %v580_v49 = vpop.xlane.xlu1 %579  ;;  %2222 = vmatpush3.bf16.msra.mxu0 %v2221_v35  ;;  %v2950_v47 = vsub.s32 %v1011_v22, %v2519_v60 }
 0x103   :  { %v535_v52 = vpop.xlane.xlu0 %534  ;;  %v1323_v54 = vsel %vm988_vm6, %v1322_v18, %v2863_v45  ;;  %v763_v36 = vmul.f32 0.015625, %v580_v49  ;;  %2223 = vmatprep.subr.bf16.mxu0 %v2283_v3  ;;  %v2993_v49 = vsub.s32 %v1018_v21, %v2519_v60 }
 0x104   :  { %v1249_v55 = vsel %vm995_vm7, %v1248_v31, %v2867_v27  ;;  %v748_v61 = vmul.f32 0.015625, %v535_v52  ;;  %v2224_v27 = vpack.c.bf16 %v800_v34, %v799_v32  ;;  %v2285_v31 = vmov 0.0  }
 0x105   :  { %v1470_v50 = vrot.slane %v763_v36, %v2609_v19  ;;  %2189 = vmatprep.mubr.msk.f32.mxu0 %vm2284_vm11, %v2285_v31  ;;  %2208 = vmatprep.mubr.msk.f32.mxu1 %vm2284_vm11, %v2285_v31 }
 0x106   :  { %v1396_v45 = vrot.slane %v748_v61, %v2651_v63  ;;  %v310_v62 = vpop.xlane.xlu1 %309  ;;  %2225 = vmatpush3.bf16.msra.mxu0 %v2224_v27 }
 0x107   :  { %v625_v48 = vpop.xlane.xlu0 %624  ;;  %v1471_v59 = vsel %vm974_vm4, %v1470_v50, %v2887_v6  ;;  %v673_v12 = vmul.f32 0.015625, %v310_v62  ;;  %2226 = vmatprep.subr.bf16.mxu0 %v2283_v3 }
 0x108   :  { %v1397_v8 = vsel %vm981_vm5, %v1396_v45, %v2891_v7  ;;  %v778_v13 = vmul.f32 0.015625, %v625_v48 }
 0x109   :  { %v1015_v46 = vrot.slane %v673_v12, %v2950_v47 }
 0x10a   :  { %v1544_v6 = vrot.slane %v778_v13, %v2581_v51  ;;  %v403_v7 = vpop.xlane.xlu1 %402  ;;  %2228 = vmatpush3.bf16.msra.mxu0 %v2227_v10  ;;  %v804_v51 = vld [vmem:[%s3216_s1 + $0x68] sm:$0xff] }
 0x10b   :  { %v358_v14 = vpop.xlane.xlu0 %357  ;;  %v1017_v0 = vsel %vm1016_vm10, %v1015_v46, %v1010_v30  ;;  %v704_v24 = vmul.f32 0.015625, %v403_v7  ;;  %2229 = vmatprep.subr.bf16.mxu0 %v2283_v3  ;;  %v2230_v30 = vpack.c.bf16 %v804_v51, %v803_v25 }
 0x10c   :  { %v1545_v5 = vsel %vm967_vm3, %v1544_v6, %v1540_v15  ;;  %v689_v9 = vmul.f32 0.015625, %v358_v14  ;;  %vm1608_vm3 = vcmask 1042434  }
 0x10d   :  { %v1179_v28 = vrot.slane %v704_v24, %v2870_v53 }
 0x10e   :  { %v1105_v17 = vrot.slane %v689_v9, %v2950_v47  ;;  %v493_v26 = vpop.xlane.xlu1 %492  ;;  %2231 = vmatpush3.bf16.msra.mxu0 %v2230_v30 }
 0x10f   :  { %v448_v15 = vpop.xlane.xlu0 %447  ;;  %v1180_v20 = vsel %vm1009_vm9, %v1179_v28, %v1175_v41  ;;  %v734_v4 = vmul.f32 0.015625, %v493_v26  ;;  %2232 = vmatprep.subr.bf16.mxu0 %v2283_v3  ;;  %v2233_v41 = vpack.c.bf16 %v806_v37, %v805_v33 }
 0x110   :  { %v1106_v11 = vsel %vm1016_vm10, %v1105_v17, %v1101_v42  ;;  %v719_v57 = vmul.f32 0.015625, %v448_v15 }
 0x111   :  { %v1327_v38 = vrot.slane %v734_v4, %v2768_v40 }
 0x112   :  { %v1253_v39 = vrot.slane %v719_v57, %v2816_v56  ;;  %v583_v42 = vpop.xlane.xlu1 %582  ;;  %2234 = vmatpush3.bf16.msra.mxu0 %v2233_v41 }
 0x113   :  { %v538_v23 = vpop.xlane.xlu0 %537  ;;  %v1328_v29 = vsel %vm995_vm7, %v1327_v38, %v1323_v54  ;;  %v764_v16 = vmul.f32 0.015625, %v583_v42 }
 0x114   :  { %v1254_v44 = vsel %vm1002_vm8, %v1253_v39, %v1249_v55  ;;  %v749_v18 = vmul.f32 0.015625, %v538_v23 }
 0x115   :  { %v1475_v22 = vrot.slane %v764_v16, %v2651_v63 }
 0x116   :  { %v1401_v35 = vrot.slane %v749_v18, %v2713_v43  ;;  %v313_v52 = vpop.xlane.xlu1 %312 }
 0x117   :  { %v628_v36 = vpop.xlane.xlu0 %627  ;;  %v1476_v54 = vsel %vm981_vm5, %v1475_v22, %v1471_v59  ;;  %v674_v61 = vmul.f32 0.015625, %v313_v52 }
 0x118   :  { %v1402_v55 = vsel %vm988_vm6, %v1401_v35, %v1397_v8  ;;  %v779_v32 = vmul.f32 0.015625, %v628_v36 }
 0x119   :  { %v1022_v34 = vrot.slane %v674_v61, %v2993_v49 }
 0x11a   :  { %v1549_v50 = vrot.slane %v779_v32, %v2609_v19  ;;  %v406_v45 = vpop.xlane.xlu1 %405 }
 0x11b   :  { %v361_v27 = vpop.xlane.xlu0 %360  ;;  %v1024_v62 = vsel %vm1023_vm12, %v1022_v34, %v1017_v0  ;;  %v705_v12 = vmul.f32 0.015625, %v406_v45  ;;  %v1025_v0 = vadd.s32 4294967200, %v2512_v58 }
 0x11c   :  { %v1550_v48 = vsel %vm974_vm4, %v1549_v50, %v1545_v5  ;;  %v690_v13 = vmul.f32 0.015625, %v361_v27  ;;  %vm1610_vm4 = vcmask 1043459  }
 0x11d   :  { %v1184_v2 = vrot.slane %v705_v12, %v2950_v47  ;;  %v3013_v26 = vsub.s32 %v1025_v0, %v2519_v60 }
 0x11e   :  { %v1110_v59 = vrot.slane %v690_v13, %v2993_v49  ;;  %v496_v8 = vpop.xlane.xlu1 %495 }
 0x11f   :  { %v451_v1 = vpop.xlane.xlu0 %450  ;;  %v1185_v46 = vsel %vm1016_vm10, %v1184_v2, %v1180_v20  ;;  %v735_v10 = vmul.f32 0.015625, %v496_v8 }
 0x120   :  { %v1111_v6 = vsel %vm1023_vm12, %v1110_v59, %v1106_v11  ;;  %v720_v19 = vmul.f32 0.015625, %v451_v1 }
 0x121   :  { %v1332_v7 = vrot.slane %v735_v10, %v2816_v56 }
 0x122   :  { %v1258_v14 = vrot.slane %v720_v19, %v2870_v53  ;;  %v586_v5 = vpop.xlane.xlu1 %585 }
 0x123   :  { %v541_v24 = vpop.xlane.xlu0 %540  ;;  %v1333_v9 = vsel %vm1002_vm8, %v1332_v7, %v1328_v29  ;;  %v765_v51 = vmul.f32 0.015625, %v586_v5 }
 0x124   :  { %v1259_v25 = vsel %vm1009_vm9, %v1258_v14, %v1254_v44  ;;  %v750_v28 = vmul.f32 0.015625, %v541_v24 }
 0x125   :  { %v1480_v17 = vrot.slane %v765_v51, %v2713_v43 }
 0x126   :  { %v1406_v30 = vrot.slane %v750_v28, %v2768_v40  ;;  %v316_v15 = vpop.xlane.xlu1 %315 }
 0x127   :  { %v631_v20 = vpop.xlane.xlu0 %630  ;;  %v1481_v11 = vsel %vm988_vm6, %v1480_v17, %v1476_v54  ;;  %v675_v57 = vmul.f32 0.015625, %v316_v15 }
 0x128   :  { %v1407_v4 = vsel %vm995_vm7, %v1406_v30, %v1402_v55  ;;  %v780_v21 = vmul.f32 0.015625, %v631_v20  ;;  %v1032_v55 = vadd.s32 4294967192, %v2512_v58 }
 0x129   :  { %v1029_v33 = vrot.slane %v675_v57, %v3013_v26 }
 0x12a   :  { %v1554_v37 = vrot.slane %v780_v21, %v2651_v63  ;;  %v409_v38 = vpop.xlane.xlu1 %408  ;;  %v3033_v12 = vsub.s32 %v1032_v55, %v2519_v60 }
 0x12b   :  { %v364_v39 = vpop.xlane.xlu0 %363  ;;  %v1031_v41 = vsel %vm1030_vm13, %v1029_v33, %v1024_v62  ;;  %v706_v23 = vmul.f32 0.015625, %v409_v38 }
 0x12c   :  { %v1555_v42 = vsel %vm981_vm5, %v1554_v37, %v1550_v48  ;;  %v691_v29 = vmul.f32 0.015625, %v364_v39  ;;  %vm1612_vm5 = vcmask 1044484  }
 0x12d   :  { %v1189_v44 = vrot.slane %v706_v23, %v2993_v49 }
 0x12e   :  { %v1115_v16 = vrot.slane %v691_v29, %v3013_v26  ;;  %v499_v18 = vpop.xlane.xlu1 %498 }
 0x12f   :  { %v454_v31 = vpop.xlane.xlu0 %453  ;;  %v1190_v22 = vsel %vm1023_vm12, %v1189_v44, %v1185_v46  ;;  %v736_v52 = vmul.f32 0.015625, %v499_v18 }
 0x130   :  { %v1116_v35 = vsel %vm1030_vm13, %v1115_v16, %v1111_v6  ;;  %v721_v63 = vmul.f32 0.015625, %v454_v31 }
 0x131   :  { %v1337_v36 = vrot.slane %v736_v52, %v2870_v53 }
 0x132   :  { %v1263_v54 = vrot.slane %v721_v63, %v2950_v47  ;;  %v589_v61 = vpop.xlane.xlu1 %588 }
 0x133   :  { %v544_v32 = vpop.xlane.xlu0 %543  ;;  %v1338_v34 = vsel %vm1009_vm9, %v1337_v36, %v1333_v9  ;;  %v766_v45 = vmul.f32 0.015625, %v589_v61 }
 0x134   :  { %v1264_v50 = vsel %vm1016_vm10, %v1263_v54, %v1259_v25  ;;  %v751_v27 = vmul.f32 0.015625, %v544_v32 }
 0x135   :  { %v1485_v62 = vrot.slane %v766_v45, %v2768_v40  ;;  %v1046_v45 = vadd.s32 4294967176, %v2512_v58 }
 0x136   :  { %v1411_v48 = vrot.slane %v751_v27, %v2816_v56  ;;  %v319_v13 = vpop.xlane.xlu1 %318 }
 0x137   :  { %v634_v2 = vpop.xlane.xlu0 %633  ;;  %v1486_v59 = vsel %vm995_vm7, %v1485_v62, %v1481_v11  ;;  %v676_v1 = vmul.f32 0.015625, %v319_v13 }
 0x138   :  { %v1412_v8 = vsel %vm1002_vm8, %v1411_v48, %v1407_v4  ;;  %v781_v46 = vmul.f32 0.015625, %v634_v2  ;;  %v1039_v4 = vadd.s32 4294967184, %v2512_v58 }
 0x139   :  { %v1036_v6 = vrot.slane %v676_v1, %v3033_v12 }
 0x13a   :  { %v1559_v10 = vrot.slane %v781_v46, %v2713_v43  ;;  %v412_v19 = vpop.xlane.xlu1 %411  ;;  %v3059_v23 = vsub.s32 %v1039_v4, %v2519_v60 }
 0x13b   :  { %v367_v7 = vpop.xlane.xlu0 %366  ;;  %v1038_v14 = vsel %vm1037_vm14, %v1036_v6, %v1031_v41  ;;  %v707_v5 = vmul.f32 0.015625, %v412_v19 }
 0x13c   :  { %v1560_v0 = vsel %vm988_vm6, %v1559_v10, %v1555_v42  ;;  %v692_v24 = vmul.f32 0.015625, %v367_v7  ;;  %vm1614_vm6 = vcmask 1045509  }
 0x13d   :  { %v1194_v9 = vrot.slane %v707_v5, %v3013_v26 }
 0x13e   :  { %v1120_v25 = vrot.slane %v692_v24, %v3033_v12  ;;  %v502_v51 = vpop.xlane.xlu1 %501 }
 0x13f   :  { %v457_v28 = vpop.xlane.xlu0 %456  ;;  %v3044_v17 = vsel %vm1030_vm13, %v1194_v9, %v1190_v22  ;;  %v737_v43 = vmul.f32 0.015625, %v502_v51 }
 0x140   :  { %v1121_v30 = vsel %vm1037_vm14, %v1120_v25, %v1116_v35  ;;  %v722_v15 = vmul.f32 0.015625, %v457_v28 }
 0x141   :  { %v1342_v20 = vrot.slane %v737_v43, %v2950_v47 }
 0x142   :  { %v1268_v11 = vrot.slane %v722_v15, %v2993_v49  ;;  %v592_v57 = vpop.xlane.xlu1 %591 }
 0x143   :  { %v547_v21 = vpop.xlane.xlu0 %546  ;;  %v3051_v33 = vsel %vm1016_vm10, %v1342_v20, %v1338_v34  ;;  %v767_v38 = vmul.f32 0.015625, %v592_v57 }
 0x144   :  { %v3054_v37 = vsel %vm1023_vm12, %v1268_v11, %v1264_v50  ;;  %v752_v39 = vmul.f32 0.015625, %v547_v21 }
 0x145   :  { %v1490_v41 = vrot.slane %v767_v38, %v2816_v56 }
 0x146   :  { %v1416_v42 = vrot.slane %v752_v39, %v2870_v53  ;;  %v322_v29 = vpop.xlane.xlu1 %321 }
 0x147   :  { %v637_v44 = vpop.xlane.xlu0 %636  ;;  %v3062_v16 = vsel %vm1002_vm8, %v1490_v41, %v1486_v59  ;;  %v677_v31 = vmul.f32 0.015625, %v322_v29 }
 0x148   :  { %v3065_v18 = vsel %vm1009_vm9, %v1416_v42, %v1412_v8  ;;  %v782_v22 = vmul.f32 0.015625, %v637_v44 }
 0x149   :  { %v1043_v35 = vrot.slane %v677_v31, %v3059_v23 }
 0x14a   :  { %v1564_v52 = vrot.slane %v782_v22, %v2768_v40  ;;  %v415_v63 = vpop.xlane.xlu1 %414  ;;  %v3081_v40 = vsub.s32 %v1046_v45, %v2519_v60 }
 0x14b   :  { %v370_v36 = vpop.xlane.xlu0 %369  ;;  %v1045_v54 = vsel %vm1044_vm15, %v1043_v35, %v1038_v14 }
 0x14c   :  { %v3071_v55 = vsel %vm995_vm7, %v1564_v52, %v1560_v0  ;;  %v693_v27 = vmul.f32 0.015625, %v370_v36  ;;  %v708_v0 = vmul.f32 0.015625, %v415_v63  ;;  %vm1616_vm7 = vcmask 1046534  }
 0x14e   :  { %v505_v61 = vpop.xlane.xlu1 %504  ;;  %v1125_v2 = vrot.slane %v693_v27, %v3059_v23  ;;  %v1199_v25 = vrot.slane %v708_v0, %v3033_v12 }
 0x14f   :  { %v460_v32 = vpop.xlane.xlu0 %459 }
 0x150   :  { %v1126_v58 = vsel %vm1044_vm15, %v1125_v2, %v1121_v30  ;;  %v1200_v30 = vsel %vm1037_vm14, %v1199_v25, %v3044_v17  ;;  %v723_v38 = vmul.f32 0.015625, %v460_v32 }
 0x152   :  { %v3073_v34 = vpop.xlane.xlu1 %594  ;;  %v1273_v31 = vrot.slane %v723_v38, %v3013_v26 }
 0x153   :  { %v3075_v50 = vpop.xlane.xlu0 %549 }
 0x154   :  { %v1274_v36 = vsel %vm1030_vm13, %v1273_v31, %v3054_v37 }
 0x156   :  { %v325_v62 = vpop.xlane.xlu1 %324 }
 0x157   :  { %v3078_v48 = vpop.xlane.xlu0 %639  ;;  %v678_v13 = vmul.f32 0.015625, %v325_v62 }
 0x159   :  { %v1050_v1 = vrot.slane %v678_v13, %v3081_v40  ;;  %v738_v13 = vmul.f32 0.015625, %v505_v61 }
 0x15a   :  { %v418_v59 = vpop.xlane.xlu1 %417 }
 0x15b   :  { %v373_v8 = vpop.xlane.xlu0 %372  ;;  %v1052_v7 = vsel %vm1051_vm1, %v1050_v1, %v1045_v54  ;;  %v709_v5 = vmul.f32 0.015625, %v418_v59  ;;  %v1347_v37 = vrot.slane %v738_v13, %v2993_v49 }
 0x15c   :  { %v694_v46 = vmul.f32 0.015625, %v373_v8 }
 0x15d   :  { %v1204_v51 = vrot.slane %v709_v5, %v3059_v23 }
 0x15e   :  { %v1130_v6 = vrot.slane %v694_v46, %v3081_v40  ;;  %v508_v10 = vpop.xlane.xlu1 %507 }
 0x15f   :  { %v463_v19 = vpop.xlane.xlu0 %462  ;;  %v1205_v11 = vsel %vm1044_vm15, %v1204_v51, %v1200_v30  ;;  %v739_v59 = vmul.f32 0.015625, %v508_v10  ;;  %v1348_v10 = vsel %vm1023_vm12, %v1347_v37, %v3051_v33 }
 0x160   :  { %v1131_v60 = vsel %vm1051_vm1, %v1130_v6, %v1126_v58  ;;  %v724_v41 = vmul.f32 0.015625, %v463_v19  ;;  %v768_v19 = vmul.f32 0.015625, %v3073_v34 }
 0x161   :  { %v1607_v14 = vsel %vm1606_vm2, %v1131_v60, %v1052_v7  ;;  %v1352_v7 = vrot.slane %v739_v59, %v3013_v26  ;;  %v753_v60 = vmul.f32 0.015625, %v3075_v50 }
 0x162   :  { %v598_v24 = vpop.xlane.xlu1 %597  ;;  %v1278_v22 = vrot.slane %v724_v41, %v3033_v12 }
 0x163   :  { %v553_v9 = vpop.xlane.xlu0 %552  ;;  %v1353_v34 = vsel %vm1030_vm13, %v1352_v7, %v1348_v10  ;;  %v1421_v50 = vrot.slane %v753_v60, %v2950_v47 }
 0x164   :  { %v1279_v54 = vsel %vm1037_vm14, %v1278_v22, %v1274_v36  ;;  %v754_v25 = vmul.f32 0.015625, %v553_v9 }
 0x166   :  { %v421_v28 = vpop.xlane.xlu1 %420  ;;  %v1426_v41 = vrot.slane %v754_v25, %v2993_v49 }
 0x167   :  { %v3091_v43 = vpop.xlane.xlu0 %642  ;;  %v710_v15 = vmul.f32 0.015625, %v421_v28  ;;  %v1495_v28 = vrot.slane %v768_v19, %v2870_v53 }
 0x168   :  { %v784_v36 = vmul.f32 0.015625, %v3091_v43 }
 0x169   :  { %v1209_v20 = vrot.slane %v710_v15, %v3081_v40  ;;  %v769_v15 = vmul.f32 0.015625, %v598_v24 }
 0x16a   :  { %v511_v4 = vpop.xlane.xlu1 %510  ;;  %v1574_v37 = vrot.slane %v784_v36, %v2870_v53 }
 0x16b   :  { %v466_v57 = vpop.xlane.xlu0 %465  ;;  %v1210_v21 = vsel %vm1051_vm1, %v1209_v20, %v1205_v11  ;;  %v740_v1 = vmul.f32 0.015625, %v511_v4 }
 0x16c   :  { %v1609_v39 = vsel %vm1608_vm3, %v1210_v21, %v1607_v14  ;;  %v725_v42 = vmul.f32 0.015625, %v466_v57  ;;  %v783_v57 = vmul.f32 0.015625, %v3078_v48  ;;  %v1496_v48 = vsel %vm1009_vm9, %v1495_v28, %v3062_v16 }
 0x16d   :  { %v1357_v14 = vrot.slane %v740_v1, %v3033_v12 }
 0x16e   :  { %v601_v29 = vpop.xlane.xlu1 %600  ;;  %v1283_v17 = vrot.slane %v725_v42, %v3059_v23  ;;  %v1500_v42 = vrot.slane %v769_v15, %v2950_v47 }
 0x16f   :  { %v556_v44 = vpop.xlane.xlu0 %555  ;;  %v1358_v20 = vsel %vm1037_vm14, %v1357_v14, %v1353_v34  ;;  %v770_v21 = vmul.f32 0.015625, %v601_v29  ;;  %v1422_v29 = vsel %vm1016_vm10, %v1421_v50, %v3065_v18 }
 0x170   :  { %v1284_v45 = vsel %vm1044_vm15, %v1283_v17, %v1279_v54  ;;  %v755_v30 = vmul.f32 0.015625, %v556_v44  ;;  %v1501_v18 = vsel %vm1016_vm10, %v1500_v42, %v1496_v48  ;;  %v1697_v42 = vld [vmem:[%s3218_s3] sm:$0xff] }
 0x171   :  { %v1505_v54 = vrot.slane %v770_v21, %v2993_v49  ;;  %v1701_v48 = vld [vmem:[%s3218_s3 + $0x20] sm:$0xff] }
 0x172   :  { %v469_v35 = vpop.xlane.xlu1 %468  ;;  %v1431_v44 = vrot.slane %v755_v30, %v3013_v26 }
 0x173   :  { %v646_v52 = vpop.xlane.xlu0 %645  ;;  %v726_v63 = vmul.f32 0.015625, %v469_v35 }
 0x174   :  { %v785_v13 = vmul.f32 0.015625, %v646_v52  ;;  %v1506_v52 = vsel %vm1023_vm12, %v1505_v54, %v1501_v18  ;;  %v1807_v54 = vld [vmem:[%s3217_s2] ss:$0 sm:$0xff]  ;;  %s2286_s2 = smov [#allocation2]  }
 0x175   :  { %v1288_v32 = vrot.slane %v726_v63, %v3081_v40  ;;  %v1569_v63 = vrot.slane %v783_v57, %v2816_v56  ;;  %s1799_s19 = sshll.u32 %s2286_s2, 4  ;;  %s1800_s19 = int_to_ptr.vmem [resolvable:$true] %s1799_s19 }
 0x176   :  { %v559_v27 = vpop.xlane.xlu1 %558  ;;  %s2259_s20 = scalar_lea.vmem %s1800_s19, 128  ;;  %p2264_p1 = scmp.lt.s32.totalorder %s1800_s19, %s1800_s19 }
 0x177   :  { %v514_v62 = vpop.xlane.xlu0 %513  ;;  %v1289_v2 = vsel %vm1051_vm1, %v1288_v32, %v1284_v45  ;;  %v756_v11 = vmul.f32 0.015625, %v559_v27  ;;  %p2260_p0 = scmp.ne.s32.totalorder %s1800_s19, %s2259_s20  ;;  %p2265_p2 = scmp.lt.s32.totalorder %s2259_s20, %s2259_s20 }
 0x178   :  { %v1611_v8 = vsel %vm1610_vm4, %v1289_v2, %v1609_v39  ;;  %v741_v46 = vmul.f32 0.015625, %v514_v62  ;;  %v1427_v62 = vsel %vm1023_vm12, %v1426_v41, %v1422_v29  ;;  %v1702_v29 = vld [vmem:[%s3218_s3 + $0x28] sm:$0xff] }
 0x179   :  { %v1436_v17 = vrot.slane %v756_v11, %v3033_v12  ;;  %v1432_v59 = vsel %vm1030_vm13, %v1431_v44, %v1427_v62  ;;  %v1698_v44 = vld [vmem:[%s3218_s3 + $0x8] sm:$0xff]  ;;  %p2266_p3 = por %p2265_p2, %p2264_p1 }
 0x17a   :  { %v649_v6 = vpop.xlane.xlu1 %648  ;;  %v1362_v61 = vrot.slane %v741_v46, %v3059_v23 }
 0x17b   :  { %v604_v58 = vpop.xlane.xlu0 %603  ;;  %v1437_v43 = vsel %vm1037_vm14, %v1436_v17, %v1432_v59  ;;  %v2242_v17 = vpack.c.bf16 %v1702_v29, %v1701_v48  ;;  %p2267_p4 = pnand %p2266_p3, %p2260_p0 }
 0x17c   :  { %v1363_v33 = vsel %vm1044_vm15, %v1362_v61, %v1358_v20  ;;  %v771_v31 = vmul.f32 0.015625, %v604_v58 }
 0x17e   :  { %v562_v0 = vpop.xlane.xlu1 %561  ;;  %v1510_v56 = vrot.slane %v771_v31, %v3013_v26  ;;  %v1700_v31 = vld [vmem:[%s3218_s3 + $0x18] sm:$0xff] }
 0x17f   :  { %v517_v5 = vpop.xlane.xlu0 %516  ;;  %v757_v9 = vmul.f32 0.015625, %v562_v0 }
 0x180   :  { %v742_v51 = vmul.f32 0.015625, %v517_v5  ;;  %v1511_v25 = vsel %vm1030_vm13, %v1510_v56, %v1506_v52 }
 0x181   :  { %v1441_v32 = vrot.slane %v757_v9, %v3059_v23 }
 0x182   :  { %v1367_v4 = vrot.slane %v742_v51, %v3081_v40  ;;  %v652_v38 = vpop.xlane.xlu1 %651  ;;  %v1570_v51 = vsel %vm1002_vm8, %v1569_v63, %v3071_v55  ;;  %vm1618_vm8 = vcmask 1047559   ;;  %v1704_v63 = vld [vmem:[%s3218_s3 + $0x38] sm:$0xff] }
 0x183   :  { %v607_v39 = vpop.xlane.xlu0 %606  ;;  %v787_v1 = vmul.f32 0.015625, %v652_v38  ;;  %v1442_v19 = vsel %vm1044_vm15, %v1441_v32, %v1437_v43  ;;  %v1575_v15 = vsel %vm1009_vm9, %v1574_v37, %v1570_v51  ;;  %vm1791_vm9 = vcmask 80896  }
 0x184   :  { %v1368_v24 = vsel %vm1051_vm1, %v1367_v4, %v1363_v33  ;;  %v772_v35 = vmul.f32 0.015625, %v607_v39 }
 0x185   :  { %v1613_v22 = vsel %vm1612_vm5, %v1368_v24, %v1611_v8  ;;  %v786_v8 = vmul.f32 0.015625, %v649_v6  ;;  %v1579_v6 = vrot.slane %v785_v13, %v2950_v47  ;;  %v1589_v28 = vrot.slane %v787_v1, %v3013_v26 }
 0x186   :  { %v610_v45 = vpop.xlane.xlu1 %609  ;;  %v1515_v46 = vrot.slane %v772_v35, %v3033_v12  ;;  %v1703_v35 = vld [vmem:[%s3218_s3 + $0x30] sm:$0xff] }
 0x187   :  { %v565_v27 = vpop.xlane.xlu0 %564  ;;  %v773_v16 = vmul.f32 0.015625, %v610_v45  ;;  %v1584_v10 = vrot.slane %v786_v8, %v2993_v49  ;;  %v1580_v11 = vsel %vm1016_vm10, %v1579_v6, %v1575_v15  ;;  %v2245_v36 = vpack.c.bf16 %v1704_v63, %v1703_v35 }
 0x188   :  { %v758_v2 = vmul.f32 0.015625, %v565_v27  ;;  %v1516_v34 = vsel %vm1037_vm14, %v1515_v46, %v1511_v25 }
 0x189   :  { %v1520_v7 = vrot.slane %v773_v16, %v3059_v23  ;;  %v1585_v26 = vsel %vm1023_vm12, %v1584_v10, %v1580_v11 }
 0x18a   :  { %v1446_v58 = vrot.slane %v758_v2, %v3081_v40  ;;  %v613_v60 = vpop.xlane.xlu1 %612  ;;  %v1590_v33 = vsel %vm1030_vm13, %v1589_v28, %v1585_v26 }
 0x18b   :  { %v655_v14 = vpop.xlane.xlu0 %654  ;;  %v774_v0 = vmul.f32 0.015625, %v613_v60  ;;  %v1521_v30 = vsel %vm1044_vm15, %v1520_v7, %v1516_v34 }
 0x18c   :  { %v1447_v61 = vsel %vm1051_vm1, %v1446_v58, %v1442_v19  ;;  %v788_v5 = vmul.f32 0.015625, %v655_v14 }
 0x18d   :  { %v1615_v53 = vsel %vm1614_vm6, %v1447_v61, %v1613_v22  ;;  %v1525_v47 = vrot.slane %v774_v0, %v3081_v40 }
 0x18e   :  { %v1594_v49 = vrot.slane %v788_v5, %v3033_v12  ;;  %v661_v20 = vpop.xlane.xlu1 %660 }
 0x18f   :  { %v658_v50 = vpop.xlane.xlu0 %657  ;;  %v790_v57 = vmul.f32 0.015625, %v661_v20  ;;  %v1526_v55 = vsel %vm1051_vm1, %v1525_v47, %v1521_v30 }
 0x190   :  { %v789_v4 = vmul.f32 0.015625, %v658_v50  ;;  %v1617_v21 = vsel %vm1616_vm7, %v1526_v55, %v1615_v53  ;;  %v1595_v39 = vsel %vm1037_vm14, %v1594_v49, %v1590_v33 }
 0x191   :  { %v1604_v38 = vrot.slane %v790_v57, %v3081_v40  ;;  %v1699_v40 = vld [vmem:[%s3218_s3 + $0x10] sm:$0xff] }
 0x192   :  { %v1599_v9 = vrot.slane %v789_v4, %v3059_v23  ;;  %v2236_v23 = vpack.c.bf16 %v1698_v44, %v1697_v42  ;;  %v2239_v22 = vpack.c.bf16 %v1700_v31, %v1699_v40 }
 0x194   :  { %v1600_v12 = vsel %vm1044_vm15, %v1599_v9, %v1595_v39  ;;  %2237 = vmatpush3.bf16.msra.mxu1 %v2236_v23 }
 0x195   :  { %v1605_v41 = vsel %vm1051_vm1, %v1604_v38, %v1600_v12  ;;  %2238 = vmatprep.subr.bf16.mxu1 %v2283_v3 }
 0x196   :  { %v1619_v24 = vsel %vm1618_vm8, %v1605_v41, %v1617_v21 }
 0x197   :  { %2190 = vmatmul.mubr.f32.vlgmr.msra.gmra.mrb[0].mxu0 %v1619_v24 }
 0x198   :  { %2240 = vmatpush3.bf16.msra.mxu1 %v2239_v22 }
 0x199   :  { %2241 = vmatprep.subr.bf16.mxu1 %v2283_v3 }
 0x19c   :  { %2243 = vmatpush3.bf16.msra.mxu1 %v2242_v17 }
 0x19d   :  { %2244 = vmatprep.subr.bf16.mxu1 %v2283_v3  ;;  %v1809_v3 = vld [vmem:[%s3219_s4] ss:$0 sm:$0xff] }
 0x1a0   :  { %2246 = vmatpush3.bf16.msra.mxu1 %v2245_v36 }
 0x26a   :  { %v1687_v32 = vpop.f32.mrb[0].mxu0 }
 0x26b   :  { %v1688_v45 = vadd.f32 %v1807_v54, %v1687_v32  ;;  %v2191_v27 = vpop.f32.mrb[1].mxu0 }
 0x26d   :  { %v1808_v62 = vmul.f32 -1.442695, %v1688_v45 }
 0x26f   :  { %2251 = vpow2.f32 %v1808_v62 }
 0x279   :  { %v2252_v13 = vpop.eup %2251 }
 0x27a   :  { %v1694_v16 = vadd.f32 1.0, %v2252_v13 }
 0x27c   :  { %2253 = vrcp.f32 %v1694_v16 }
 0x286   :  { %v2254_v2 = vpop.eup %2253 }
 0x287   :  { %2209 = vmatmul.mubr.msk.f32.vlgmr.msra.gmra.mrb[0].mxu1 %vm277_vm0, %v2254_v2 }
 0x35a   :  { %v1781_v18 = vpop.f32.mrb[0].mxu1 }
 0x35b   :  { %v1782_v59 = vadd.f32 %v1809_v3, %v1781_v18  ;;  %v2210_v8 = vpop.f32.mrb[1].mxu1 }
 0x35d   :  { %v1811_v56 = vmul.f32 -1.442695, %v1782_v59 }
 0x35f   :  { %2255 = vpow2.f32 %v1811_v56 }
 0x369   :  { %v2256_v43 = vpop.eup %2255 }
 0x36a   :  { %v1788_v1 = vadd.f32 1.0, %v2256_v43 }
 0x36c   :  { %2257 = vrcp.f32 %v1788_v1 }
 0x376   :  { %v2258_v46 = vpop.eup %2257 }
 0x377   :  { %1792 = vst.msk [vmem:[#allocation2] sm:$0xff] %vm1791_vm9, %v2258_v46 }
 0x378   :  { %2270 = shalt.err (!%p2267_p4)
}
 0x379   :  { %s2271_s22 = scalar_lea.hbm %s3220_s5, 128 }
 0x37a   :  { %p2272_p5 = scmp.ne.s32.totalorder %s3220_s5, %s2271_s22  ;;  %p2275_p6 = scmp.lt.u32.totalorder %s2271_s22, %s3220_s5 }
 0x37c   :  { %p2277_p7 = pnand %p2275_p6, %p2272_p5 }
 0x37e   :  { %2280 = shalt.err (!%p2277_p7)
}
 0x37f   :  { %1802 = dma.vmem_to_hbm [thread:$0]  %s1800_s19, 128, %s3220_s5, [#allocation3]  }
 0x380   :  { %2281 = dma.done.wait [#allocation3], 128  }
 0x381   :  { %2282 = vsyncadd [#allocation3], 4294967168 }
 0x382   :  { %1806 = vsyncpa [#allocation3], 1 }

</bundles_post_ra>
